<compile_context>
chip_gen: v5e
topology: v5e:2x2
jax: 0.10.0
libtpu: 0.0.40
codegen_flags: <defaults>
</compile_context>

<pallas_src>
import jax
import jax.numpy as jnp
from jax.experimental import pallas as pl
from jax.experimental.pallas import tpu as pltpu

EPS = 1e-5


def _fused_kernel(x_ref, s_ref, w_ref, gamma_ref, beta_ref, r_ref, o_ref):
    # x_ref:      [Cin, M]    bf16 activations, channel-major (NCHW flattened, N=1)
    # s_ref:      [1, Cin]    f32 per-channel input scale (x186)
    # w_ref:      [Cout, Cin] bf16 1x1 conv weight
    # gamma/beta: [Cout, 1]   f32 BN affine params
    # r_ref:      [Cout, M]   f32 residual (x175), channel-major (aliased with o_ref)
    # o_ref:      [Cout, M]   f32 output, channel-major

    # Fold the scale into the weight: f32 multiply (tiny, Cout*Cin), cast to
    # bf16 so the MXU consumes bf16 x bf16 and accumulates in f32.
    w_s = (w_ref[...].astype(jnp.float32) * s_ref[...]).astype(jnp.bfloat16)
    y = jnp.dot(w_s, x_ref[...],
                preferred_element_type=jnp.float32)    # 1x1 conv -> [Cout, M] f32

    m = y.shape[1]
    inv_m = 1.0 / m
    # One-pass biased batch statistics per channel (row); f32 throughout.
    sum_y = jnp.sum(y, axis=1, keepdims=True)          # [Cout, 1]
    sum_y2 = jnp.sum(y * y, axis=1, keepdims=True)     # [Cout, 1]
    mean = sum_y * inv_m
    # Clamp: E[y^2] - E[y]^2 can go slightly negative from f32 cancellation.
    var = jnp.maximum(sum_y2 * inv_m - mean * mean, 0.0)
    inv_std = jax.lax.rsqrt(var + EPS)

    # BN collapsed to per-channel affine, fused with residual add.
    a = gamma_ref[...] * inv_std                       # [Cout, 1]
    b = beta_ref[...] - mean * a                       # [Cout, 1]
    r = r_ref[...]                                     # read residual before the (aliased) store
    o_ref[...] = (y * a + b + r).astype(o_ref.dtype)


def fused_mul_conv_bn_add(x181, x186, x175, w, gamma, beta):
    """x181: [N, Cin, H, W], x186: [1, Cin, 1, 1], x175: [N, Cout, H, W]
       w:    [Cout, Cin, 1, 1] (PyTorch conv weight), gamma/beta: [Cout]
       returns [N, Cout, H, W] (NCHW), matching the PyTorch module."""
    N, Cin, H, W = x181.shape
    Cout = w.shape[0]
    M = N * H * W

    if N == 1:
        # free reshapes (contiguous NCHW -> [C, H*W]); no transpose ops emitted
        x_cm = x181.reshape(Cin, M)
        r_cm = x175.reshape(Cout, M)
    else:
        # TODO(synk): for N > 1 move this transpose into the kernel (grid over N
        # with a Squeezed batch dim) instead of two extra HBM passes here.
        x_cm = jnp.transpose(x181, (1, 0, 2, 3)).reshape(Cin, M)
        r_cm = jnp.transpose(x175, (1, 0, 2, 3)).reshape(Cout, M)

    # Narrow the two big operands to bf16 (HBM-bound kernel); everything else
    # stays f32 and accumulation / epilogue are f32 in-kernel.
    x_bf = x_cm.astype(jnp.bfloat16)
    w_bf = w.reshape(Cout, Cin).astype(jnp.bfloat16)
    s_row = x186.reshape(1, Cin).astype(jnp.float32)
    gamma_col = gamma.reshape(Cout, 1).astype(jnp.float32)
    beta_col = beta.reshape(Cout, 1).astype(jnp.float32)
    r_cm = r_cm.astype(jnp.float32)

    vmem = pl.BlockSpec(memory_space=pltpu.MemorySpace.VMEM)
    cost = pl.CostEstimate(
        flops=2 * Cout * Cin * M,
        bytes_accessed=(Cin * M * 2          # x (bf16)
                        + Cout * Cin * 2     # w (bf16)
                        + 2 * Cout * M * 4   # residual in + output out (f32)
                        + (Cin + 2 * Cout) * 4),
        transcendentals=Cout,                # rsqrt per output channel
    )

    out_cm = pl.pallas_call(
        _fused_kernel,
        out_shape=jax.ShapeDtypeStruct((Cout, M), jnp.float32),
        in_specs=[vmem] * 6,
        out_specs=vmem,
        input_output_aliases={5: 0},         # residual (input 5) aliases the output
        cost_estimate=cost,
    )(x_bf, s_row, w_bf, gamma_col, beta_col, r_cm)

    if N == 1:
        return out_cm.reshape(1, Cout, H, W)          # free reshape back to NCHW
    return jnp.transpose(out_cm.reshape(Cout, N, H, W), (1, 0, 2, 3))


def _reference(x181, x186, x175, w, gamma, beta):
    x187 = x181 * x186
    # 1x1 conv in NCHW via einsum (f32 reference)
    x188 = jnp.einsum("nchw,oc->nohw", x187, w.reshape(w.shape[0], w.shape[1]))
    mean = jnp.mean(x188, axis=(0, 2, 3), keepdims=True)
    var = jnp.mean((x188 - mean) ** 2, axis=(0, 2, 3), keepdims=True)
    x189 = (x188 - mean) / jnp.sqrt(var + EPS) * gamma.reshape(1, -1, 1, 1) \
        + beta.reshape(1, -1, 1, 1)
    return x189 + x175


if __name__ == "__main__":
    key = jax.random.PRNGKey(0)
    k1, k2, k3, k4 = jax.random.split(key, 4)

    N, Cin, Cout, H, W = 1, 576, 96, 14, 14

    x181 = jax.random.normal(k1, (N, Cin, H, W), dtype=jnp.float32)
    x186 = jax.random.normal(k2, (1, Cin, 1, 1), dtype=jnp.float32)
    x175 = jax.random.normal(k3, (N, Cout, H, W), dtype=jnp.float32)

    # Deterministic parameter init (synthetic; not a checkpoint load)
    w = jax.random.normal(k4, (Cout, Cin, 1, 1), dtype=jnp.float32) * 0.05
    gamma = jnp.ones((Cout,), dtype=jnp.float32)   # PyTorch BN default weight
    beta = jnp.zeros((Cout,), dtype=jnp.float32)   # PyTorch BN default bias

    # Reference first (plain f32 path), then the bf16-input Pallas kernel.
    ref = _reference(x181, x186, x175, w, gamma, beta)
    ref = jax.block_until_ready(ref)

    out = fused_mul_conv_bn_add(x181, x186, x175, w, gamma, beta)
    out = jax.block_until_ready(out)

    assert out.shape == (N, Cout, H, W)
    # bf16 x / w with f32 accumulation: ~1e-2 relative error expected.
    assert jnp.allclose(out, ref, atol=5e-2, rtol=5e-2), \
        float(jnp.max(jnp.abs(out - ref)))

    print("KERNEL_OK")
</pallas_src>

<mosaic_0001>
module attributes {stable_mosaic.version = 11 : i64} {
  func.func @_fused_kernel(%arg0: memref<576x196xbf16, #tpu.memory_space<vmem>>, %arg1: memref<1x576xf32, #tpu.memory_space<vmem>>, %arg2: memref<96x576xbf16, #tpu.memory_space<vmem>>, %arg3: memref<96x1xf32, #tpu.memory_space<vmem>>, %arg4: memref<96x1xf32, #tpu.memory_space<vmem>>, %arg5: memref<96x196xf32, #tpu.memory_space<vmem>>, %arg6: memref<96x196xf32, #tpu.memory_space<vmem>>) attributes {dimension_semantics = [], scalar_prefetch = 0 : i64, scratch_operands = 0 : i64, tpu.core_type = #tpu.core_type<tc>} {
    %c0 = arith.constant 0 : index
    %c0_0 = arith.constant 0 : index
    %0 = vector.load %arg2[%c0, %c0_0] : memref<96x576xbf16, #tpu.memory_space<vmem>>, vector<96x576xbf16>
    %1 = arith.extf %0 : vector<96x576xbf16> to vector<96x576xf32>
    %c0_1 = arith.constant 0 : index
    %c0_2 = arith.constant 0 : index
    %2 = vector.load %arg1[%c0_1, %c0_2] : memref<1x576xf32, #tpu.memory_space<vmem>>, vector<1x576xf32>
    %3 = vector.broadcast %2 : vector<1x576xf32> to vector<96x576xf32>
    %4 = arith.mulf %1, %3 : vector<96x576xf32>
    %5 = arith.truncf %4 : vector<96x576xf32> to vector<96x576xbf16>
    %c0_3 = arith.constant 0 : index
    %c0_4 = arith.constant 0 : index
    %6 = vector.load %arg0[%c0_3, %c0_4] : memref<576x196xbf16, #tpu.memory_space<vmem>>, vector<576x196xbf16>
    %cst = arith.constant dense<0.000000e+00> : vector<96x196xf32>
    %7 = tpu.matmul %5, %6, %cst {dimension_numbers = #tpu.dot_dimension_numbers<[1], [0], [0], [1], [0, 0, 1, 1], [], []>} : vector<96x576xbf16>, vector<576x196xbf16>, vector<96x196xf32> -> vector<96x196xf32>
    %cst_5 = arith.constant dense<0.000000e+00> : vector<96xf32>
    %8 = vector.multi_reduction <add>, %7, %cst_5 [1] : vector<96x196xf32> to vector<96xf32>
    %9 = vector.shape_cast %8 : vector<96xf32> to vector<96x1xf32>
    %10 = arith.mulf %7, %7 : vector<96x196xf32>
    %cst_6 = arith.constant dense<0.000000e+00> : vector<96xf32>
    %11 = vector.multi_reduction <add>, %10, %cst_6 [1] : vector<96x196xf32> to vector<96xf32>
    %12 = vector.shape_cast %11 : vector<96xf32> to vector<96x1xf32>
    %cst_7 = arith.constant 0.00510204071 : f32
    %13 = vector.broadcast %cst_7 : f32 to vector<96x1xf32>
    %14 = arith.mulf %9, %13 : vector<96x1xf32>
    %cst_8 = arith.constant 0.00510204071 : f32
    %15 = vector.broadcast %cst_8 : f32 to vector<96x1xf32>
    %16 = arith.mulf %12, %15 : vector<96x1xf32>
    %17 = arith.mulf %14, %14 : vector<96x1xf32>
    %18 = arith.subf %16, %17 : vector<96x1xf32>
    %cst_9 = arith.constant 0.000000e+00 : f32
    %19 = vector.broadcast %cst_9 : f32 to vector<96x1xf32>
    %20 = arith.maximumf %18, %19 : vector<96x1xf32>
    %cst_10 = arith.constant 9.99999974E-6 : f32
    %21 = vector.broadcast %cst_10 : f32 to vector<96x1xf32>
    %22 = arith.addf %20, %21 : vector<96x1xf32>
    %23 = math.rsqrt %22 : vector<96x1xf32>
    %c0_11 = arith.constant 0 : index
    %c0_12 = arith.constant 0 : index
    %24 = vector.load %arg3[%c0_11, %c0_12] : memref<96x1xf32, #tpu.memory_space<vmem>>, vector<96x1xf32>
    %25 = arith.mulf %24, %23 : vector<96x1xf32>
    %c0_13 = arith.constant 0 : index
    %c0_14 = arith.constant 0 : index
    %26 = vector.load %arg4[%c0_13, %c0_14] : memref<96x1xf32, #tpu.memory_space<vmem>>, vector<96x1xf32>
    %27 = arith.mulf %14, %25 : vector<96x1xf32>
    %28 = arith.subf %26, %27 : vector<96x1xf32>
    %c0_15 = arith.constant 0 : index
    %c0_16 = arith.constant 0 : index
    %29 = vector.load %arg5[%c0_15, %c0_16] : memref<96x196xf32, #tpu.memory_space<vmem>>, vector<96x196xf32>
    %30 = vector.broadcast %25 : vector<96x1xf32> to vector<96x196xf32>
    %31 = arith.mulf %7, %30 : vector<96x196xf32>
    %32 = vector.broadcast %28 : vector<96x1xf32> to vector<96x196xf32>
    %33 = arith.addf %31, %32 : vector<96x196xf32>
    %34 = arith.addf %33, %29 : vector<96x196xf32>
    %c0_17 = arith.constant 0 : index
    %c0_18 = arith.constant 0 : index
    %35 = vector.load %arg6[%c0_17, %c0_18] : memref<96x196xf32, #tpu.memory_space<vmem>>, vector<96x196xf32>
    tpu.vector_store %arg6[%c0_17, %c0_18], %34 {strides = array<i32>} : memref<96x196xf32, #tpu.memory_space<vmem>>, vector<96x196xf32>,
    return
  }
}

</mosaic_0001>

<bundles_post_ra>
// kernel: tpu_custom_call.1
= control target key start
LH: loop header
LB: loop body
LE: loop exit
PB: predicated region body
PF: predicated region fallthrough
CT: control target
= control target key end

     0   :  { %11 = vsyncpa [#allocation3], 0  ;;  %s3372_s0 = inlined_call_operand.vmem [shape: bf16[576,196], index: 0, kind: input, shape index: {}]   ;;  %s3373_s1 = inlined_call_operand.vmem [shape: f32[1,576], index: 1, kind: input, shape index: {}]   ;;  %s3374_s2 = inlined_call_operand.vmem [shape: bf16[96,576], index: 2, kind: input, shape index: {}]   ;;  %s3375_s3 = inlined_call_operand.vmem [shape: f32[96,1], index: 3, kind: input, shape index: {}]   ;;  %s3376_s4 = inlined_call_operand.vmem [shape: f32[96,1], index: 4, kind: input, shape index: {}]   ;;  %s3377_s5 = inlined_call_operand.hbm [shape: f32[96,196], index: 5, kind: input, shape index: {}, may-alias: {5,6}]   ;;  %s3378_s6 = inlined_call_operand.hbm [shape: f32[96,196], index: 6, kind: output, shape index: {}, may-alias: {5,6}]  }
   0x1   :  { %12 = vsyncpa [#allocation4], 0  ;;  %s27_s23 = sshll.u32 %s3377_s5, 4  ;;  %s2184_s24 = smov [#allocation2]   ;;  %s28_s23 = int_to_ptr.hbm [resolvable:$true] %s27_s23 }
   0x2   :  { %s29_s25 = sshll.u32 %s2184_s24, 4  ;;  %s2185_s26 = smov 256   ;;  %s30_s25 = int_to_ptr.vmem [resolvable:$true] %s29_s25 }
   0x3   :  { %s2186_s27 = smov 16  }
   0x4   :  { %35 = dma.hbm_to_vmem [thread:$0]  %s28_s23, 3072, %s30_s25, [#allocation3], %s2185_s26, %s2185_s26, %s2186_s27  }
   0x5   :  { %2180 = dma.done.wait [#allocation3], 3072  }
   0x6   :  { %2181 = vsyncadd [#allocation3], 4294964224  ;;  %v1770_v0 = vld [vmem:[%s3372_s0 + $0x70] sm:$0xf]  ;;  %v2027_v1 = vld [vmem:[%s3372_s0 + $0x74] sm:$0xf0] }
   0x7   :  { %v1834_v2 = vld [vmem:[%s3372_s0 + $0xf0] sm:$0xf]  ;;  %v1771_v3 = vor.u32 %v2027_v1, %v1770_v0  ;;  %v2043_v4 = vld [vmem:[%s3372_s0 + $0xf4] sm:$0xf0]  ;;  %v1762_v5 = vld [vmem:[%s3372_s0 + $0x60] sm:$0xf] }
   0x8   :  { %v2025_v6 = vld [vmem:[%s3372_s0 + $0x64] sm:$0xf0]  ;;  %v1835_v7 = vor.u32 %v2043_v4, %v1834_v2  ;;  %v1826_v8 = vld [vmem:[%s3372_s0 + $0xe0] sm:$0xf]  ;;  %v1754_v12 = vld [vmem:[%s3372_s0 + $0x50] sm:$0xf] }
   0x9   :  { %v2041_v9 = vld [vmem:[%s3372_s0 + $0xe4] sm:$0xf0]  ;;  %2084 = vmatpush.bf16.msra.mxu2 %v1771_v3  ;;  %690 = vmatpush.bf16.msra.mxu0 %v1771_v3  ;;  %v1763_v10 = vor.u32 %v2025_v6, %v1762_v5  ;;  %v2023_v13 = vld [vmem:[%s3372_s0 + $0x54] sm:$0xf0]  ;;  %v1818_v14 = vld [vmem:[%s3372_s0 + $0xd0] sm:$0xf] }
   0xa   :  { %2092 = vmatpush.bf16.msra.mxu3 %v1835_v7  ;;  %729 = vmatpush.bf16.msra.mxu1 %v1835_v7  ;;  %v1827_v11 = vor.u32 %v2041_v9, %v1826_v8  ;;  %v2039_v15 = vld [vmem:[%s3372_s0 + $0xd4] sm:$0xf0]  ;;  %v1755_v16 = vor.u32 %v2023_v13, %v1754_v12  ;;  %v1746_v18 = vld [vmem:[%s3372_s0 + $0x40] sm:$0xf]  ;;  %v2021_v19 = vld [vmem:[%s3372_s0 + $0x44] sm:$0xf0] }
   0xb   :  { %v1819_v17 = vor.u32 %v2039_v15, %v1818_v14  ;;  %v1810_v20 = vld [vmem:[%s3372_s0 + $0xc0] sm:$0xf]  ;;  %v2037_v21 = vld [vmem:[%s3372_s0 + $0xc4] sm:$0xf0]  ;;  %v1747_v22 = vor.u32 %v2021_v19, %v1746_v18  ;;  %v1738_v24 = vld [vmem:[%s3372_s0 + $0x30] sm:$0xf] }
   0xc   :  { %v1811_v23 = vor.u32 %v2037_v21, %v1810_v20  ;;  %v2019_v25 = vld [vmem:[%s3372_s0 + $0x34] sm:$0xf0]  ;;  %v1802_v26 = vld [vmem:[%s3372_s0 + $0xb0] sm:$0xf]  ;;  %v1730_v30 = vld [vmem:[%s3372_s0 + $0x20] sm:$0xf] }
   0xd   :  { %2085 = vmatpush.bf16.msra.mxu2 %v1763_v10  ;;  %691 = vmatpush.bf16.msra.mxu0 %v1763_v10  ;;  %v2035_v27 = vld [vmem:[%s3372_s0 + $0xb4] sm:$0xf0]  ;;  %v1739_v28 = vor.u32 %v2019_v25, %v1738_v24  ;;  %v2017_v31 = vld [vmem:[%s3372_s0 + $0x24] sm:$0xf0]  ;;  %v1794_v32 = vld [vmem:[%s3372_s0 + $0xa0] sm:$0xf] }
   0xe   :  { %2093 = vmatpush.bf16.msra.mxu3 %v1827_v11  ;;  %730 = vmatpush.bf16.msra.mxu1 %v1827_v11  ;;  %v1803_v29 = vor.u32 %v2035_v27, %v1802_v26  ;;  %v2033_v33 = vld [vmem:[%s3372_s0 + $0xa4] sm:$0xf0]  ;;  %v59_v34 = vld [vmem:[%s3374_s2 + $0x78] sm:$0xff]  ;;  %v2308_v35 = vld [vmem:[%s3373_s1] sm:$0x1f]  ;;  %v1731_v36 = vor.u32 %v2017_v31, %v1730_v30  ;;  %vm671_vm0 = vcmask 523264  }
   0xf   :  { %v62_v37 = vld [vmem:[%s3374_s2 + $0x8c] sm:$0xff]  ;;  %v41_v38 = vld [vmem:[%s3374_s2] sm:$0xff]  ;;  %v44_v39 = vld [vmem:[%s3374_s2 + $0x14] sm:$0xff]  ;;  %v1795_v40 = vor.u32 %v2033_v33, %v1794_v32  ;;  %v107_v45 = vunpack.c.l.bf16 %v59_v34  ;;  %v2332_v46 = vperm.slane %v2308_v35, 0  ;;  %v108_v47 = vunpack.c.h.bf16 %v59_v34  ;;  %s1699_s29 = sshll.u32 %s3378_s6, 4  ;;  %s1700_s29 = int_to_ptr.hbm [resolvable:$true] %s1699_s29 }
  0x10   :  { %v1722_v41 = vld [vmem:[%s3372_s0 + $0x10] sm:$0xf]  ;;  %v2015_v42 = vld [vmem:[%s3372_s0 + $0x14] sm:$0xf0]  ;;  %v1714_v48 = vld [vmem:[%s3372_s0] sm:$0xf]  ;;  %v112_v50 = vunpack.c.l.bf16 %v62_v37  ;;  %v77_v52 = vunpack.c.l.bf16 %v41_v38  ;;  %v82_v53 = vunpack.c.l.bf16 %v44_v39  ;;  %v113_v55 = vunpack.c.h.bf16 %v62_v37 }
  0x11   :  { %2086 = vmatpush.bf16.msra.mxu2 %v1755_v16  ;;  %692 = vmatpush.bf16.msra.mxu0 %v1755_v16  ;;  %v1786_v43 = vld [vmem:[%s3372_s0 + $0x90] sm:$0xf]  ;;  %v2031_v44 = vld [vmem:[%s3372_s0 + $0x94] sm:$0xf0]  ;;  %v2013_v49 = vld [vmem:[%s3372_s0 + $0x4] sm:$0xf0]  ;;  %v1723_v54 = vor.u32 %v2015_v42, %v1722_v41  ;;  %v78_v56 = vunpack.c.h.bf16 %v41_v38  ;;  %v83_v57 = vunpack.c.h.bf16 %v44_v39  ;;  %v179_v62 = vmul.f32 %v2332_v46, %v107_v45 }
  0x12   :  { %2094 = vmatpush.bf16.msra.mxu3 %v1819_v17  ;;  %731 = vmatpush.bf16.msra.mxu1 %v1819_v17  ;;  %v2341_v51 = vperm.slane %v2308_v35, 1  ;;  %v1787_v58 = vor.u32 %v2031_v44, %v1786_v43  ;;  %v1715_v59 = vor.u32 %v2013_v49, %v1714_v48  ;;  %v1778_v60 = vld [vmem:[%s3372_s0 + $0x80] sm:$0xf]  ;;  %v2029_v61 = vld [vmem:[%s3372_s0 + $0x84] sm:$0xf0]  ;;  %v184_v0 = vmul.f32 %v2332_v46, %v112_v50  ;;  %v68_v39 = vld [vmem:[%s3374_s2 + $0xb4] sm:$0xff] }
  0x13   :  { %v1898_v63 = vld [vmem:[%s3372_s0 + $0x170] sm:$0xf]  ;;  %v2059_v2 = vld [vmem:[%s3372_s0 + $0x174] sm:$0xf0]  ;;  %v149_v3 = vmul.f32 %v2332_v46, %v77_v52  ;;  %v154_v4 = vmul.f32 %v2332_v46, %v82_v53  ;;  %v1779_v10 = vor.u32 %v2029_v61, %v1778_v60  ;;  %v1890_v11 = vld [vmem:[%s3372_s0 + $0x160] sm:$0xf]  ;;  %v123_v61 = vunpack.c.h.bf16 %v68_v39 }
  0x14   :  { %v180_v1 = vmul.f32 %v2341_v51, %v108_v47  ;;  %v1962_v5 = vld [vmem:[%s3372_s0 + $0x1f0] sm:$0xf]  ;;  %v2075_v6 = vld [vmem:[%s3372_s0 + $0x1f4] sm:$0xf0]  ;;  %v185_v7 = vmul.f32 %v2341_v51, %v113_v55  ;;  %v150_v8 = vmul.f32 %v2341_v51, %v78_v56  ;;  %v155_v9 = vmul.f32 %v2341_v51, %v83_v57  ;;  %v2026_v16 = vld [vmem:[%s3372_s0 + $0x74] sm:$0xf] }
  0x15   :  { %2087 = vmatpush.bf16.msra.mxu2 %v1747_v22  ;;  %693 = vmatpush.bf16.msra.mxu0 %v1747_v22  ;;  %v1994_v12 = vld [vmem:[%s3372_s0 + $0x230] sm:$0xf]  ;;  %v1899_v13 = vor.u32 %v2059_v2, %v1898_v63  ;;  %v1963_v14 = vor.u32 %v2075_v6, %v1962_v5  ;;  %v2083_v15 = vld [vmem:[%s3372_s0 + $0x234] sm:$0xf0]  ;;  %v1772_v17 = vld [vmem:[%s3372_s0 + $0x78] sm:$0xf0]  ;;  %v2384_v18 = vpack.c.bf16 %v184_v0, %v179_v62 }
  0x16   :  { %2095 = vmatpush.bf16.msra.mxu3 %v1811_v23  ;;  %732 = vmatpush.bf16.msra.mxu1 %v1811_v23  ;;  %v2386_v19 = vpack.c.bf16 %v154_v4, %v149_v3  ;;  %v2057_v20 = vld [vmem:[%s3372_s0 + $0x164] sm:$0xf0]  ;;  %v1954_v21 = vld [vmem:[%s3372_s0 + $0x1e0] sm:$0xf]  ;;  %v2397_v23 = vpack.c.bf16 %v185_v7, %v180_v1  ;;  %v2399_v24 = vpack.c.bf16 %v155_v9, %v150_v8  ;;  %v1882_v26 = vld [vmem:[%s3372_s0 + $0x150] sm:$0xf] }
  0x17   :  { %v2073_v22 = vld [vmem:[%s3372_s0 + $0x1e4] sm:$0xf0]  ;;  %v1995_v25 = vor.u32 %v2083_v15, %v1994_v12  ;;  %v2055_v27 = vld [vmem:[%s3372_s0 + $0x154] sm:$0xf0]  ;;  %v1891_v30 = vor.u32 %v2057_v20, %v1890_v11  ;;  %v1764_v32 = vld [vmem:[%s3372_s0 + $0x68] sm:$0xf0] }
  0x18   :  { %v1955_v31 = vor.u32 %v2073_v22, %v1954_v21  ;;  %v1986_v33 = vld [vmem:[%s3372_s0 + $0x220] sm:$0xf]  ;;  %v2081_v34 = vld [vmem:[%s3372_s0 + $0x224] sm:$0xf0]  ;;  %v2071_v37 = vld [vmem:[%s3372_s0 + $0x1d4] sm:$0xf0]  ;;  %v1883_v47 = vor.u32 %v2055_v27, %v1882_v26 }
  0x19   :  { %2088 = vmatpush.bf16.msra.mxu2 %v1739_v28  ;;  %694 = vmatpush.bf16.msra.mxu0 %v1739_v28  ;;  %v1775_v28 = vor.u32 %v2026_v16, %v1772_v17  ;;  %v65_v38 = vld [vmem:[%s3374_s2 + $0xa0] sm:$0xff]  ;;  %v1987_v44 = vor.u32 %v2081_v34, %v1986_v33  ;;  %v2022_v45 = vld [vmem:[%s3372_s0 + $0x54] sm:$0xf]  ;;  %v1756_v49 = vld [vmem:[%s3372_s0 + $0x58] sm:$0xf0]  ;;  %v195_v17 = vmul.f32 %v2341_v51, %v123_v61  ;;  %vm1080_vm1 = vcmask 556032  }
  0x1a   :  { %2096 = vmatpush.bf16.msra.mxu3 %v1803_v29  ;;  %733 = vmatpush.bf16.msra.mxu1 %v1803_v29  ;;  %v2024_v29 = vld [vmem:[%s3372_s0 + $0x64] sm:$0xf]  ;;  %v50_v41 = vld [vmem:[%s3374_s2 + $0x3c] sm:$0xff]  ;;  %v1978_v50 = vld [vmem:[%s3372_s0 + $0x210] sm:$0xf]  ;;  %v117_v53 = vunpack.c.l.bf16 %v65_v38  ;;  %v118_v60 = vunpack.c.h.bf16 %v65_v38  ;;  %v1759_v1 = vor.u32 %v2022_v45, %v1756_v49 }
  0x1b   :  { %v1874_v42 = vld [vmem:[%s3372_s0 + $0x140] sm:$0xf]  ;;  %v1767_v43 = vor.u32 %v2024_v29, %v1764_v32  ;;  %v2079_v52 = vld [vmem:[%s3372_s0 + $0x214] sm:$0xf0]  ;;  %v92_v56 = vunpack.c.l.bf16 %v50_v41  ;;  %v2053_v57 = vld [vmem:[%s3372_s0 + $0x144] sm:$0xf0]  ;;  %v93_v63 = vunpack.c.h.bf16 %v50_v41 }
  0x1c   :  { %v1866_v0 = vld [vmem:[%s3372_s0 + $0x130] sm:$0xf]  ;;  %v2020_v2 = vld [vmem:[%s3372_s0 + $0x44] sm:$0xf]  ;;  %v1979_v3 = vor.u32 %v2079_v52, %v1978_v50  ;;  %v1875_v4 = vor.u32 %v2053_v57, %v1874_v42  ;;  %v1748_v6 = vld [vmem:[%s3372_s0 + $0x48] sm:$0xf0]  ;;  %v189_v9 = vmul.f32 %v2332_v46, %v117_v53  ;;  %v190_v16 = vmul.f32 %v2341_v51, %v118_v60 }
  0x1d   :  { %2089 = vmatpush.bf16.msra.mxu2 %v1731_v36  ;;  %695 = vmatpush.bf16.msra.mxu0 %v1731_v36  ;;  %v1946_v36 = vld [vmem:[%s3372_s0 + $0x1d0] sm:$0xf]  ;;  %v1970_v7 = vld [vmem:[%s3372_s0 + $0x200] sm:$0xf]  ;;  %v2077_v8 = vld [vmem:[%s3372_s0 + $0x204] sm:$0xf0]  ;;  %v164_v12 = vmul.f32 %v2332_v46, %v92_v56  ;;  %v165_v21 = vmul.f32 %v2341_v51, %v93_v63  ;;  %v1751_v22 = vor.u32 %v2020_v2, %v1748_v6 }
  0x1e   :  { %2097 = vmatpush.bf16.msra.mxu3 %v1795_v40  ;;  %734 = vmatpush.bf16.msra.mxu1 %v1795_v40  ;;  %v47_v40 = vld [vmem:[%s3374_s2 + $0x28] sm:$0xff]  ;;  %v1947_v48 = vor.u32 %v2071_v37, %v1946_v36  ;;  %v2067_v15 = vld [vmem:[%s3372_s0 + $0x1b4] sm:$0xf0]  ;;  %v2018_v29 = vld [vmem:[%s3372_s0 + $0x34] sm:$0xf]  ;;  %v2519_v37 = vpack.c.bf16 %v195_v17, %v190_v16 }
  0x1f   :  { %v87_v55 = vunpack.c.l.bf16 %v47_v40  ;;  %v88_v62 = vunpack.c.h.bf16 %v47_v40  ;;  %v2049_v33 = vld [vmem:[%s3372_s0 + $0x124] sm:$0xf0]  ;;  %v1922_v34 = vld [vmem:[%s3372_s0 + $0x1a0] sm:$0xf]  ;;  %v2016_v45 = vld [vmem:[%s3372_s0 + $0x24] sm:$0xf] }
  0x20   :  { %v2065_v36 = vld [vmem:[%s3372_s0 + $0x1a4] sm:$0xf0]  ;;  %v2531_v40 = vld [vmem:[%s3374_s2 + $0xdc] sm:$0xff]  ;;  %v1914_v49 = vld [vmem:[%s3372_s0 + $0x190] sm:$0xf] }
  0x21   :  { %2090 = vmatpush.bf16.msra.mxu2 %v1723_v54  ;;  %696 = vmatpush.bf16.msra.mxu0 %v1723_v54  ;;  %v122_v54 = vunpack.c.l.bf16 %v68_v39  ;;  %v159_v11 = vmul.f32 %v2332_v46, %v87_v55  ;;  %v160_v20 = vmul.f32 %v2341_v51, %v88_v62  ;;  %v2526_v39 = vld [vmem:[%s3374_s2 + $0xc8] sm:$0xff]  ;;  %v2063_v50 = vld [vmem:[%s3372_s0 + $0x194] sm:$0xf0]  ;;  %v53_v52 = vld [vmem:[%s3374_s2 + $0x50] sm:$0xff] }
  0x22   :  { %2098 = vmatpush.bf16.msra.mxu3 %v1787_v58  ;;  %735 = vmatpush.bf16.msra.mxu1 %v1787_v58  ;;  %v1938_v58 = vld [vmem:[%s3372_s0 + $0x1c0] sm:$0xf]  ;;  %v56_v53 = vld [vmem:[%s3374_s2 + $0x64] sm:$0xff]  ;;  %v1915_v61 = vor.u32 %v2063_v50, %v1914_v49  ;;  %v2014_v62 = vld [vmem:[%s3372_s0 + $0x14] sm:$0xf] }
  0x23   :  { %v2508_v32 = vpack.c.bf16 %v164_v12, %v159_v11  ;;  %v2521_v38 = vpack.c.bf16 %v165_v21, %v160_v20  ;;  %v1842_v56 = vld [vmem:[%s3372_s0 + $0x100] sm:$0xf]  ;;  %v2045_v57 = vld [vmem:[%s3372_s0 + $0x104] sm:$0xf0]  ;;  %v1724_v63 = vld [vmem:[%s3372_s0 + $0x18] sm:$0xf0]  ;;  %v102_v2 = vunpack.c.l.bf16 %v56_v53 }
  0x24   :  { %v1836_v11 = vld [vmem:[%s3372_s0 + $0xf8] sm:$0xf0]  ;;  %v2058_v12 = vld [vmem:[%s3372_s0 + $0x174] sm:$0xf]  ;;  %v1843_v17 = vor.u32 %v2045_v57, %v1842_v56  ;;  %v2012_v21 = vld [vmem:[%s3372_s0 + $0x4] sm:$0xf] }
  0x25   :  { %2091 = vmatpush.bf16.msra.mxu2 %v1715_v59  ;;  %697 = vmatpush.bf16.msra.mxu0 %v1715_v59  ;;  %v2069_v59 = vld [vmem:[%s3372_s0 + $0x1c4] sm:$0xf0]  ;;  %v2072_v56 = vld [vmem:[%s3372_s0 + $0x1e4] sm:$0xf]  ;;  %v1956_v57 = vld [vmem:[%s3372_s0 + $0x1e8] sm:$0xf0] }
  0x26   :  { %2099 = vmatpush.bf16.msra.mxu3 %v1779_v10  ;;  %736 = vmatpush.bf16.msra.mxu1 %v1779_v10  ;;  %v1939_v5 = vor.u32 %v2069_v59, %v1938_v58  ;;  %v194_v10 = vmul.f32 %v2332_v46, %v122_v54  ;;  %v127_v54 = vunpack.c.l.bf16 %v2526_v39  ;;  %v2074_v58 = vld [vmem:[%s3372_s0 + $0x1f4] sm:$0xf]  ;;  %v132_v59 = vunpack.c.l.bf16 %v2531_v40 }
  0x28   :  { %713 = vmatmul.bf16.vlgmr.msra.gmra.mxu2 %v2384_v18  ;;  %698 = vmatmul.bf16.vlgmr.msra.gmra.mxu0 %v2386_v19  ;;  %v204_v16 = vmul.f32 %v2332_v46, %v132_v59  ;;  %v1959_v59 = vor.u32 %v2072_v56, %v1956_v57 }
  0x29   :  { %768 = vmatpush.bf16.msrb.mxu2 %v1899_v13  ;;  %752 = vmatmul.bf16.vlgmr.msra.gmra.mxu3 %v2397_v23  ;;  %v2051_v13 = vld [vmem:[%s3372_s0 + $0x134] sm:$0xf0] }
  0x2a   :  { %807 = vmatpush.bf16.msrb.mxu3 %v1963_v14  ;;  %737 = vmatmul.bf16.vlgmr.msra.gmra.mxu1 %v2399_v24  ;;  %v1930_v14 = vld [vmem:[%s3372_s0 + $0x1b0] sm:$0xf]  ;;  %v1867_v26 = vor.u32 %v2051_v13, %v1866_v0  ;;  %v1964_v0 = vld [vmem:[%s3372_s0 + $0x1f8] sm:$0xf0] }
  0x2b   :  { %850 = vmatpush.bf16.msrb.mxu0 %v1995_v25  ;;  %885 = vmatpush.bf16.msrb.mxu1 %v1775_v28  ;;  %v1971_v25 = vor.u32 %v2077_v8, %v1970_v7  ;;  %v1931_v27 = vor.u32 %v2067_v15, %v1930_v14  ;;  %v1858_v28 = vld [vmem:[%s3372_s0 + $0x120] sm:$0xf]  ;;  %v1967_v6 = vor.u32 %v2074_v58, %v1964_v0  ;;  %v128_v7 = vunpack.c.h.bf16 %v2526_v39  ;;  %v1900_v13 = vld [vmem:[%s3372_s0 + $0x178] sm:$0xf0]  ;;  %v2038_v58 = vld [vmem:[%s3372_s0 + $0xd4] sm:$0xf] }
  0x2c   :  { %v1859_v42 = vor.u32 %v2049_v33, %v1858_v28  ;;  %v133_v8 = vunpack.c.h.bf16 %v2531_v40  ;;  %v199_v14 = vmul.f32 %v2332_v46, %v127_v54  ;;  %v1727_v15 = vor.u32 %v2014_v62, %v1724_v63  ;;  %v2040_v40 = vld [vmem:[%s3372_s0 + $0xe4] sm:$0xf]  ;;  %v43_v54 = vld [vmem:[%s3374_s2 + $0x10] sm:$0xf]  ;;  %v1884_v62 = vld [vmem:[%s3372_s0 + $0x158] sm:$0xf0] }
  0x2d   :  { %769 = vmatpush.bf16.msrb.mxu2 %v1891_v30  ;;  %v1740_v30 = vld [vmem:[%s3372_s0 + $0x38] sm:$0xf0]  ;;  %v1903_v28 = vor.u32 %v2058_v12, %v1900_v13  ;;  %v200_v33 = vmul.f32 %v2341_v51, %v128_v7  ;;  %v2676_v0 = vperm.slane %v2308_v35, 2 }
  0x2e   :  { %808 = vmatpush.bf16.msrb.mxu3 %v1955_v31  ;;  %v2506_v31 = vpack.c.bf16 %v194_v10, %v189_v9  ;;  %v1743_v41 = vor.u32 %v2018_v29, %v1740_v30  ;;  %v98_v9 = vunpack.c.h.bf16 %v53_v52  ;;  %v103_v10 = vunpack.c.h.bf16 %v56_v53  ;;  %v2082_v29 = vld [vmem:[%s3372_s0 + $0x234] sm:$0xf]  ;;  %v1996_v30 = vld [vmem:[%s3372_s0 + $0x238] sm:$0xf0] }
  0x2f   :  { %886 = vmatpush.bf16.msrb.mxu1 %v1767_v43  ;;  %851 = vmatpush.bf16.msrb.mxu0 %v1987_v44  ;;  %v1923_v43 = vor.u32 %v2065_v36, %v1922_v34  ;;  %v1850_v44 = vld [vmem:[%s3372_s0 + $0x110] sm:$0xf]  ;;  %v205_v34 = vmul.f32 %v2341_v51, %v133_v8  ;;  %v45_v53 = vld [vmem:[%s3374_s2 + $0x1c] sm:$0xff] }
  0x30   :  { %v170_v36 = vmul.f32 %v2341_v51, %v98_v9  ;;  %v175_v39 = vmul.f32 %v2341_v51, %v103_v10  ;;  %v1892_v51 = vld [vmem:[%s3372_s0 + $0x168] sm:$0xf0]  ;;  %v85_v8 = vunpack.c.h.bf16 %v45_v53  ;;  %v2682_v9 = vperm.slane %v2308_v35, 3 }
  0x31   :  { %770 = vmatpush.bf16.msrb.mxu2 %v1883_v47  ;;  %v1732_v47 = vld [vmem:[%s3372_s0 + $0x28] sm:$0xf0] }
  0x32   :  { %809 = vmatpush.bf16.msrb.mxu3 %v1947_v48  ;;  %v2047_v48 = vld [vmem:[%s3372_s0 + $0x114] sm:$0xf0]  ;;  %v1735_v55 = vor.u32 %v2016_v45, %v1732_v47  ;;  %v2637_v47 = vpack.c.bf16 %v205_v34, %v200_v33  ;;  %v1988_v33 = vld [vmem:[%s3372_s0 + $0x228] sm:$0xf0] }
  0x33   :  { %887 = vmatpush.bf16.msrb.mxu1 %v1759_v1  ;;  %852 = vmatpush.bf16.msrb.mxu0 %v1979_v3  ;;  %v1851_v60 = vor.u32 %v2047_v48, %v1850_v44  ;;  %v97_v1 = vunpack.c.l.bf16 %v53_v52  ;;  %v1906_v3 = vld [vmem:[%s3372_s0 + $0x180] sm:$0xf]  ;;  %v2633_v44 = vpack.c.bf16 %v204_v16, %v199_v14  ;;  %v2639_v48 = vpack.c.bf16 %v175_v39, %v170_v36  ;;  %v42_v52 = vld [vmem:[%s3374_s2 + $0x8] sm:$0xff] }
  0x34   :  { %v79_v63 = vunpack.c.l.bf16 %v42_v52  ;;  %v80_v7 = vunpack.c.h.bf16 %v42_v52 }
  0x35   :  { %771 = vmatpush.bf16.msrb.mxu2 %v1875_v4  ;;  %v2061_v4 = vld [vmem:[%s3372_s0 + $0x184] sm:$0xf0] }
  0x36   :  { %810 = vmatpush.bf16.msrb.mxu3 %v1939_v5  ;;  %v2042_v5 = vld [vmem:[%s3372_s0 + $0xf4] sm:$0xf]  ;;  %v1907_v20 = vor.u32 %v2061_v4, %v1906_v3  ;;  %v84_v3 = vunpack.c.l.bf16 %v45_v53  ;;  %v81_v4 = vunpack.c.l.bf16 %v43_v54  ;;  %v151_v10 = vmul.f32 %v2676_v0, %v79_v63 }
  0x37   :  { %888 = vmatpush.bf16.msrb.mxu1 %v1751_v22  ;;  %853 = vmatpush.bf16.msrb.mxu0 %v1971_v25  ;;  %v1716_v22 = vld [vmem:[%s3372_s0 + $0x8] sm:$0xf0]  ;;  %v169_v25 = vmul.f32 %v2332_v46, %v97_v1  ;;  %v152_v14 = vmul.f32 %v2682_v9, %v80_v7  ;;  %v1804_v7 = vld [vmem:[%s3372_s0 + $0xb8] sm:$0xf0] }
  0x38   :  { %718 = vmatmul.bf16.gmra.mxu2 %v2506_v31  ;;  %703 = vmatmul.bf16.gmra.mxu0 %v2508_v32 }
  0x39   :  { %772 = vmatpush.bf16.msrb.mxu2 %v1867_v26  ;;  %757 = vmatmul.bf16.gmra.mxu3 %v2519_v37  ;;  %v174_v26 = vmul.f32 %v2332_v46, %v102_v2  ;;  %v1719_v46 = vor.u32 %v2012_v21, %v1716_v22  ;;  %v51_v21 = vld [vmem:[%s3374_s2 + $0x44] sm:$0xff]  ;;  %v49_v22 = vld [vmem:[%s3374_s2 + $0x38] sm:$0xf] }
  0x3a   :  { %811 = vmatpush.bf16.msrb.mxu3 %v1931_v27  ;;  %742 = vmatmul.bf16.gmra.mxu1 %v2521_v38  ;;  %v1839_v27 = vor.u32 %v2042_v5, %v1836_v11  ;;  %v156_v11 = vmul.f32 %v2676_v0, %v84_v3  ;;  %v95_v53 = vunpack.c.h.bf16 %v51_v21  ;;  %v55_v3 = vld [vmem:[%s3374_s2 + $0x60] sm:$0xf] }
  0x3b   :  { %889 = vmatpush.bf16.msrb.mxu1 %v1743_v41  ;;  %1002 = vmatpush.bf16.msra.mxu0 %v1967_v6  ;;  %v1828_v41 = vld [vmem:[%s3372_s0 + $0xe8] sm:$0xf0]  ;;  %v2635_v45 = vpack.c.bf16 %v174_v26, %v169_v25  ;;  %v2679_v6 = vperm.slane %v2308_v35, 4  ;;  %v2070_v26 = vld [vmem:[%s3372_s0 + $0x1d4] sm:$0xf] }
  0x3c   :  { %v1831_v49 = vor.u32 %v2040_v40, %v1828_v41  ;;  %v2690_v16 = vpack.c.bf16 %v156_v11, %v151_v10  ;;  %v52_v25 = vld [vmem:[%s3374_s2 + $0x4c] sm:$0xf]  ;;  %v2068_v41 = vld [vmem:[%s3372_s0 + $0x1c4] sm:$0xf]  ;;  %v1868_v11 = vld [vmem:[%s3372_s0 + $0x138] sm:$0xf0] }
  0x3d   :  { %773 = vmatpush.bf16.msrb.mxu2 %v1859_v42  ;;  %v1999_v42 = vor.u32 %v2082_v29, %v1996_v30  ;;  %v153_v12 = vmul.f32 %v2679_v6, %v81_v4  ;;  %v1812_v30 = vld [vmem:[%s3372_s0 + $0xc8] sm:$0xf0]  ;;  %v58_v4 = vld [vmem:[%s3374_s2 + $0x74] sm:$0xf] }
  0x3e   :  { %812 = vmatpush.bf16.msrb.mxu3 %v1923_v43  ;;  %v2056_v43 = vld [vmem:[%s3372_s0 + $0x164] sm:$0xf]  ;;  %v1876_v40 = vld [vmem:[%s3372_s0 + $0x148] sm:$0xf0] }
  0x3f   :  { %890 = vmatpush.bf16.msrb.mxu1 %v1735_v55  ;;  %v1895_v50 = vor.u32 %v2056_v43, %v1892_v51  ;;  %v46_v55 = vld [vmem:[%s3374_s2 + $0x24] sm:$0xf]  ;;  %1003 = vmatpush.bf16.msra.mxu0 %v1959_v59  ;;  %v91_v43 = vunpack.c.l.bf16 %v49_v22  ;;  %v96_v51 = vunpack.c.l.bf16 %v52_v25  ;;  %v2078_v22 = vld [vmem:[%s3372_s0 + $0x214] sm:$0xf] }
  0x40   :  { %v86_v5 = vunpack.c.l.bf16 %v46_v55 }
  0x41   :  { %774 = vmatpush.bf16.msrb.mxu2 %v1851_v60  ;;  %v1820_v60 = vld [vmem:[%s3372_s0 + $0xd8] sm:$0xf0]  ;;  %v163_v57 = vmul.f32 %v2679_v6, %v91_v43 }
  0x42   :  { %813 = vmatpush.bf16.msrb.mxu3 %v1915_v61  ;;  %v2054_v61 = vld [vmem:[%s3372_s0 + $0x154] sm:$0xf]  ;;  %v1823_v1 = vor.u32 %v2038_v58, %v1820_v60  ;;  %v158_v13 = vmul.f32 %v2679_v6, %v86_v5  ;;  %v168_v58 = vmul.f32 %v2679_v6, %v96_v51  ;;  %v167_v60 = vmul.f32 %v2682_v9, %v95_v53  ;;  %v60_v53 = vld [vmem:[%s3374_s2 + $0x80] sm:$0xff] }
  0x43   :  { %891 = vmatpush.bf16.msrb.mxu1 %v1727_v15  ;;  %v1887_v2 = vor.u32 %v2054_v61, %v1884_v62  ;;  %v157_v15 = vmul.f32 %v2682_v9, %v85_v8  ;;  %v2034_v5 = vld [vmem:[%s3372_s0 + $0xb4] sm:$0xf] }
  0x44   :  { %v2751_v62 = vpack.c.bf16 %v168_v58, %v163_v57  ;;  %v2050_v8 = vld [vmem:[%s3372_s0 + $0x134] sm:$0xf]  ;;  %v1807_v10 = vor.u32 %v2034_v5, %v1804_v7  ;;  %v2064_v57 = vld [vmem:[%s3372_s0 + $0x1a4] sm:$0xf]  ;;  %v1924_v58 = vld [vmem:[%s3372_s0 + $0x1a8] sm:$0xf0]  ;;  %v109_v5 = vunpack.c.l.bf16 %v60_v53 }
  0x45   :  { %775 = vmatpush.bf16.msrb.mxu2 %v1843_v17  ;;  %v2692_v17 = vpack.c.bf16 %v158_v13, %v153_v12  ;;  %v2694_v35 = vpack.c.bf16 %v157_v15, %v152_v14  ;;  %v1932_v12 = vld [vmem:[%s3372_s0 + $0x1b8] sm:$0xf0]  ;;  %v1871_v14 = vor.u32 %v2050_v8, %v1868_v11  ;;  %v110_v11 = vunpack.c.h.bf16 %v60_v53 }
  0x46   :  { %814 = vmatpush.bf16.msrb.mxu3 %v1907_v20  ;;  %v48_v20 = vld [vmem:[%s3374_s2 + $0x30] sm:$0xff] }
  0x47   :  { %892 = vmatpush.bf16.msrb.mxu1 %v1719_v46  ;;  %v89_v34 = vunpack.c.l.bf16 %v48_v20  ;;  %v2052_v46 = vld [vmem:[%s3372_s0 + $0x144] sm:$0xf]  ;;  %v90_v52 = vunpack.c.h.bf16 %v48_v20 }
  0x48   :  { %723 = vmatmul.bf16.gmra.mxu2 %v2633_v44  ;;  %708 = vmatmul.bf16.gmra.mxu0 %v2635_v45  ;;  %v2032_v20 = vld [vmem:[%s3372_s0 + $0xa4] sm:$0xf] }
  0x49   :  { %924 = vmatpush.bf16.msra.mxu2 %v1839_v27  ;;  %762 = vmatmul.bf16.gmra.mxu3 %v2637_v47  ;;  %v1948_v27 = vld [vmem:[%s3372_s0 + $0x1d8] sm:$0xf0]  ;;  %v161_v55 = vmul.f32 %v2676_v0, %v89_v34  ;;  %v162_v59 = vmul.f32 %v2682_v9, %v90_v52 }
  0x4a   :  { %963 = vmatpush.bf16.msra.mxu3 %v1903_v28  ;;  %747 = vmatmul.bf16.gmra.mxu1 %v2639_v48  ;;  %v2036_v28 = vld [vmem:[%s3372_s0 + $0xc4] sm:$0xf]  ;;  %v1951_v29 = vor.u32 %v2070_v26, %v1948_v27  ;;  %v101_v26 = vunpack.c.l.bf16 %v55_v3  ;;  %v106_v27 = vunpack.c.l.bf16 %v58_v4 }
  0x4b   :  { %1045 = vmatpush.bf16.msra.mxu1 %v1999_v42  ;;  %v1815_v36 = vor.u32 %v2036_v28, %v1812_v30  ;;  %v94_v42 = vunpack.c.l.bf16 %v51_v21  ;;  %v2753_v63 = vpack.c.bf16 %v167_v60, %v162_v59  ;;  %v1796_v21 = vld [vmem:[%s3372_s0 + $0xa8] sm:$0xf0]  ;;  %v2048_v30 = vld [vmem:[%s3372_s0 + $0x124] sm:$0xf]  ;;  %v2030_v59 = vld [vmem:[%s3372_s0 + $0x94] sm:$0xf]  ;;  %v1927_v60 = vor.u32 %v2064_v57, %v1924_v58 }
  0x4c   :  { %1004 = vmatpush.bf16.msra.mxu0 %v1951_v29  ;;  %v1799_v28 = vor.u32 %v2032_v20, %v1796_v21  ;;  %v1980_v29 = vld [vmem:[%s3372_s0 + $0x218] sm:$0xf0]  ;;  %v182_v20 = vmul.f32 %v2682_v9, %v110_v11 }
  0x4d   :  { %925 = vmatpush.bf16.msra.mxu2 %v1831_v49  ;;  %v1879_v49 = vor.u32 %v2052_v46, %v1876_v40  ;;  %v166_v56 = vmul.f32 %v2676_v0, %v94_v42  ;;  %v178_v42 = vmul.f32 %v2679_v6, %v106_v27  ;;  %v66_v27 = vld [vmem:[%s3374_s2 + $0xa8] sm:$0xff] }
  0x4e   :  { %964 = vmatpush.bf16.msra.mxu3 %v1895_v50  ;;  %v1940_v50 = vld [vmem:[%s3372_s0 + $0x1c8] sm:$0xf0] }
  0x4f   :  { %v1943_v54 = vor.u32 %v2068_v41, %v1940_v50  ;;  %v2749_v61 = vpack.c.bf16 %v166_v56, %v161_v55  ;;  %v173_v41 = vmul.f32 %v2679_v6, %v101_v26  ;;  %v61_v55 = vld [vmem:[%s3374_s2 + $0x88] sm:$0xf]  ;;  %v64_v56 = vld [vmem:[%s3374_s2 + $0x9c] sm:$0xf] }
  0x50   :  { %v111_v8 = vunpack.c.l.bf16 %v61_v55  ;;  %v2044_v55 = vld [vmem:[%s3372_s0 + $0x104] sm:$0xf] }
  0x51   :  { %926 = vmatpush.bf16.msra.mxu2 %v1823_v1  ;;  %1005 = vmatpush.bf16.msra.mxu0 %v1943_v54  ;;  %v54_v1 = vld [vmem:[%s3374_s2 + $0x58] sm:$0xff]  ;;  %v2816_v50 = vpack.c.bf16 %v178_v42, %v173_v41  ;;  %v120_v41 = vunpack.c.h.bf16 %v66_v27  ;;  %v2028_v42 = vld [vmem:[%s3372_s0 + $0x84] sm:$0xf] }
  0x52   :  { %965 = vmatpush.bf16.msra.mxu3 %v1887_v2  ;;  %v57_v2 = vld [vmem:[%s3374_s2 + $0x6c] sm:$0xff]  ;;  %v99_v13 = vunpack.c.l.bf16 %v54_v1  ;;  %v63_v54 = vld [vmem:[%s3374_s2 + $0x94] sm:$0xff] }
  0x53   :  { %v104_v25 = vunpack.c.l.bf16 %v57_v2  ;;  %v105_v34 = vunpack.c.h.bf16 %v57_v2  ;;  %v1852_v2 = vld [vmem:[%s3372_s0 + $0x118] sm:$0xf0]  ;;  %v114_v7 = vunpack.c.l.bf16 %v63_v54 }
  0x54   :  { %v171_v46 = vmul.f32 %v2676_v0, %v99_v13 }
  0x55   :  { %927 = vmatpush.bf16.msra.mxu2 %v1815_v36  ;;  %v1983_v36 = vor.u32 %v2078_v22, %v1980_v29  ;;  %v176_v40 = vmul.f32 %v2676_v0, %v104_v25  ;;  %v177_v51 = vmul.f32 %v2682_v9, %v105_v34  ;;  %v186_v13 = vmul.f32 %v2676_v0, %v114_v7  ;;  %v67_v29 = vld [vmem:[%s3374_s2 + $0xb0] sm:$0xf] }
  0x56   :  { %966 = vmatpush.bf16.msra.mxu3 %v1879_v49 }
  0x57   :  { %v2814_v49 = vpack.c.bf16 %v176_v40, %v171_v46  ;;  %v121_v46 = vunpack.c.l.bf16 %v67_v29 }
  0x58   :  { %776 = vmatmul.bf16.vlgmr.msrb.gmra.mxu2 %v2690_v16  ;;  %2000 = vmatmul.msk.bf16.vlgmr.msrb.gmra.mxu0 %vm671_vm0, %v2692_v17 }
  0x59   :  { %815 = vmatmul.bf16.vlgmr.msrb.gmra.mxu3 %v2694_v35  ;;  %928 = vmatpush.bf16.msra.mxu2 %v1807_v10  ;;  %v116_v10 = vunpack.c.l.bf16 %v64_v56  ;;  %v1844_v56 = vld [vmem:[%s3372_s0 + $0x108] sm:$0xf0] }
  0x5a   :  { %893 = vmatmul.bf16.vlgmr.msrb.gmra.mxu1 %v2386_v19  ;;  %v2080_v19 = vld [vmem:[%s3372_s0 + $0x224] sm:$0xf]  ;;  %967 = vmatpush.bf16.msra.mxu3 %v1871_v14  ;;  %v183_v14 = vmul.f32 %v2679_v6, %v111_v8  ;;  %v1847_v58 = vor.u32 %v2044_v55, %v1844_v56 }
  0x5b   :  { %v1991_v39 = vor.u32 %v2080_v19, %v1988_v33  ;;  %v1860_v19 = vld [vmem:[%s3372_s0 + $0x128] sm:$0xf0]  ;;  %v100_v33 = vunpack.c.h.bf16 %v54_v1  ;;  %v1788_v1 = vld [vmem:[%s3372_s0 + $0x98] sm:$0xf0]  ;;  %v2060_v8 = vld [vmem:[%s3372_s0 + $0x184] sm:$0xf] }
  0x5c   :  { %v1791_v3 = vor.u32 %v2030_v59, %v1788_v1  ;;  %v193_v1 = vmul.f32 %v2679_v6, %v121_v46 }
  0x5d   :  { %1046 = vmatpush.bf16.msra.mxu1 %v1991_v39  ;;  %v1863_v39 = vor.u32 %v2048_v30, %v1860_v19  ;;  %929 = vmatpush.bf16.msra.mxu2 %v1799_v28  ;;  %v172_v43 = vmul.f32 %v2682_v9, %v100_v33  ;;  %v69_v28 = vld [vmem:[%s3374_s2 + $0xbc] sm:$0xff]  ;;  %v70_v30 = vld [vmem:[%s3374_s2 + $0xc4] sm:$0xf]  ;;  %v2062_v19 = vld [vmem:[%s3372_s0 + $0x194] sm:$0xf] }
  0x5e   :  { %v1916_v33 = vld [vmem:[%s3372_s0 + $0x198] sm:$0xf0]  ;;  %v126_v40 = vunpack.c.l.bf16 %v70_v30 }
  0x5f   :  { %968 = vmatpush.bf16.msra.mxu3 %v1863_v39  ;;  %v2818_v52 = vpack.c.bf16 %v177_v51, %v172_v43  ;;  %v1919_v34 = vor.u32 %v2062_v19, %v1916_v33  ;;  %v124_v39 = vunpack.c.l.bf16 %v69_v28  ;;  %v1780_v43 = vld [vmem:[%s3372_s0 + $0x88] sm:$0xf0]  ;;  %v2076_v51 = vld [vmem:[%s3372_s0 + $0x204] sm:$0xf] }
  0x60   :  { %v1783_v53 = vor.u32 %v2028_v42, %v1780_v43 }
  0x61   :  { %1047 = vmatpush.bf16.msra.mxu1 %v1983_v36  ;;  %930 = vmatpush.bf16.msra.mxu2 %v1791_v3  ;;  %v119_v36 = vunpack.c.l.bf16 %v66_v27 }
  0x63   :  { %v191_v59 = vmul.f32 %v2676_v0, %v119_v36 }
  0x65   :  { %931 = vmatpush.bf16.msra.mxu2 %v1783_v53 }
  0x68   :  { %781 = vmatmul.bf16.gmra.mxu2 %v2749_v61  ;;  %2001 = vmatmul.msk.bf16.gmra.mxu0 %vm671_vm0, %v2751_v62 }
  0x69   :  { %820 = vmatmul.bf16.gmra.mxu3 %v2753_v63 }
  0x6a   :  { %898 = vmatmul.bf16.gmra.mxu1 %v2508_v32  ;;  %v2066_v32 = vld [vmem:[%s3372_s0 + $0x1b4] sm:$0xf] }
  0x6b   :  { %v1935_v15 = vor.u32 %v2066_v32, %v1932_v12  ;;  %v115_v32 = vunpack.c.h.bf16 %v63_v54  ;;  %v181_v12 = vmul.f32 %v2676_v0, %v109_v5  ;;  %v1972_v54 = vld [vmem:[%s3372_s0 + $0x208] sm:$0xf0] }
  0x6c   :  { %v1975_v57 = vor.u32 %v2076_v51, %v1972_v54 }
  0x6d   :  { %1006 = vmatpush.bf16.msra.mxu0 %v1935_v15  ;;  %v188_v15 = vmul.f32 %v2679_v6, %v116_v10  ;;  %v187_v21 = vmul.f32 %v2682_v9, %v115_v32  ;;  %v2861_v22 = vpack.c.bf16 %v186_v13, %v181_v12  ;;  %v1908_v10 = vld [vmem:[%s3372_s0 + $0x188] sm:$0xf0]  ;;  %v72_v32 = vld [vmem:[%s3374_s2 + $0xd0] sm:$0xff]  ;;  %v75_v12 = vld [vmem:[%s3374_s2 + $0xe4] sm:$0xff] }
  0x6e   :  { %1048 = vmatpush.bf16.msra.mxu1 %v1975_v57  ;;  %v1911_v11 = vor.u32 %v2060_v8, %v1908_v10  ;;  %v73_v13 = vld [vmem:[%s3374_s2 + $0xd8] sm:$0xf]  ;;  %v135_v29 = vunpack.c.h.bf16 %v75_v12 }
  0x6f   :  { %v2863_v25 = vpack.c.bf16 %v188_v15, %v183_v14  ;;  %v2865_v26 = vpack.c.bf16 %v187_v21, %v182_v20  ;;  %v76_v14 = vld [vmem:[%s3374_s2 + $0xec] sm:$0xf]  ;;  %v129_v15 = vunpack.c.l.bf16 %v72_v32  ;;  %v134_v20 = vunpack.c.l.bf16 %v75_v12 }
  0x70   :  { %v131_v21 = vunpack.c.l.bf16 %v73_v13  ;;  %v136_v27 = vunpack.c.l.bf16 %v76_v14  ;;  %v207_v36 = vmul.f32 %v2682_v9, %v135_v29 }
  0x71   :  { %1007 = vmatpush.bf16.msra.mxu0 %v1927_v60  ;;  %v196_v60 = vmul.f32 %v2676_v0, %v124_v39  ;;  %v206_v30 = vmul.f32 %v2676_v0, %v134_v20 }
  0x72   :  { %v203_v19 = vmul.f32 %v2679_v6, %v131_v21  ;;  %v208_v33 = vmul.f32 %v2679_v6, %v136_v27 }
  0x74   :  { %v2951_v46 = vpack.c.bf16 %v208_v33, %v203_v19 }
  0x75   :  { %1008 = vmatpush.bf16.msra.mxu0 %v1919_v34 }
  0x78   :  { %786 = vmatmul.bf16.gmra.mxu2 %v2814_v49  ;;  %2002 = vmatmul.msk.bf16.gmra.mxu0 %vm671_vm0, %v2816_v50 }
  0x79   :  { %825 = vmatmul.bf16.gmra.mxu3 %v2818_v52  ;;  %1009 = vmatpush.bf16.msra.mxu0 %v1911_v11 }
  0x7a   :  { %903 = vmatmul.bf16.gmra.mxu1 %v2635_v45  ;;  %v2046_v45 = vld [vmem:[%s3372_s0 + $0x114] sm:$0xf] }
  0x7b   :  { %v1855_v4 = vor.u32 %v2046_v45, %v1852_v2  ;;  %v198_v45 = vmul.f32 %v2679_v6, %v126_v40  ;;  %v192_v2 = vmul.f32 %v2682_v9, %v120_v41 }
  0x7d   :  { %969 = vmatpush.bf16.msra.mxu3 %v1855_v4  ;;  %v2914_v4 = vpack.c.bf16 %v196_v60, %v191_v59  ;;  %v2916_v5 = vpack.c.bf16 %v198_v45, %v193_v1 }
  0x81   :  { %970 = vmatpush.bf16.msra.mxu3 %v1847_v58 }
  0x88   :  { %791 = vmatmul.bf16.gmra.mxu2 %v2861_v22  ;;  %2003 = vmatmul.msk.bf16.gmra.mxu0 %vm671_vm0, %v2863_v25 }
  0x89   :  { %830 = vmatmul.bf16.gmra.mxu3 %v2865_v26 }
  0x8a   :  { %908 = vmatmul.bf16.gmra.mxu1 %v2384_v18  ;;  %v125_v18 = vunpack.c.h.bf16 %v69_v28  ;;  %v130_v28 = vunpack.c.h.bf16 %v72_v32 }
  0x8c   :  { %v197_v3 = vmul.f32 %v2682_v9, %v125_v18  ;;  %v202_v34 = vmul.f32 %v2682_v9, %v130_v28 }
  0x8e   :  { %v2918_v7 = vpack.c.bf16 %v197_v3, %v192_v2  ;;  %v2953_v41 = vpack.c.bf16 %v207_v36, %v202_v34 }
  0x98   :  { %796 = vmatmul.bf16.gmra.mxu2 %v2914_v4  ;;  %2004 = vmatmul.msk.bf16.gmra.mxu0 %vm671_vm0, %v2916_v5 }
  0x99   :  { %835 = vmatmul.bf16.gmra.mxu3 %v2918_v7 }
  0x9a   :  { %913 = vmatmul.bf16.gmra.mxu1 %v2506_v31  ;;  %v201_v31 = vmul.f32 %v2676_v0, %v129_v15 }
  0x9c   :  { %v2949_v39 = vpack.c.bf16 %v206_v30, %v201_v31 }
  0xa5   :  { %v699_v40 = vpop.f32.mrf.mxu0 }
  0xa7   :  { %v738_v18 = vpop.f32.mrf.mxu1 }
  0xa8   :  { %v739_v42 = vadd.f32 %v738_v18, %v699_v40  ;;  %801 = vmatmul.bf16.gmra.mxu2 %v2949_v39  ;;  %2005 = vmatmul.msk.bf16.gmra.mxu0 %vm671_vm0, %v2951_v46 }
  0xa9   :  { %840 = vmatmul.bf16.gmra.mxu3 %v2953_v41 }
  0xaa   :  { %918 = vmatmul.bf16.gmra.mxu1 %v2633_v44 }
  0xab   :  { %v714_v0 = vpop.f32.mrf.mxu2 }
  0xac   :  { %v753_v6 = vpop.f32.mrf.mxu3 }
  0xad   :  { %v2960_v9 = vadd.f32 %v753_v6, %v714_v0  ;;  %v701_v43 = vpop.f32.mrf.mxu0 }
  0xaf   :  { %v740_v51 = vpop.f32.mrf.mxu1 }
  0xb0   :  { %v741_v53 = vadd.f32 %v740_v51, %v701_v43 }
  0xb3   :  { %v716_v54 = vpop.f32.mrf.mxu2 }
  0xb4   :  { %v755_v55 = vpop.f32.mrf.mxu3 }
  0xb5   :  { %v2962_v56 = vadd.f32 %v755_v55, %v716_v54  ;;  %v704_v57 = vpop.f32.mrf.mxu0 }
  0xb7   :  { %v743_v58 = vpop.f32.mrf.mxu1 }
  0xb8   :  { %v744_v59 = vadd.f32 %v743_v58, %v704_v57  ;;  %932 = vmatmul.bf16.vlgmr.msra.gmra.mxu2 %v2399_v24  ;;  %1010 = vmatmul.bf16.vlgmr.msra.gmra.mxu0 %v2694_v35 }
  0xb9   :  { %971 = vmatmul.bf16.vlgmr.msra.gmra.mxu3 %v2690_v16 }
  0xba   :  { %2006 = vmatmul.msk.bf16.vlgmr.msra.gmra.mxu1 %vm671_vm0, %v2692_v17 }
  0xbb   :  { %v719_v44 = vpop.f32.mrf.mxu2 }
  0xbc   :  { %v758_v60 = vpop.f32.mrf.mxu3 }
  0xbd   :  { %v2969_v1 = vadd.f32 %v758_v60, %v719_v44  ;;  %v706_v45 = vpop.f32.mrf.mxu0 }
  0xbf   :  { %v745_v2 = vpop.f32.mrf.mxu1 }
  0xc0   :  { %v746_v3 = vadd.f32 %v745_v2, %v706_v45 }
  0xc3   :  { %v721_v8 = vpop.f32.mrf.mxu2 }
  0xc4   :  { %v760_v10 = vpop.f32.mrf.mxu3 }
  0xc5   :  { %v2971_v11 = vadd.f32 %v760_v10, %v721_v8  ;;  %v709_v32 = vpop.f32.mrf.mxu0 }
  0xc7   :  { %v748_v24 = vpop.f32.mrf.mxu1 }
  0xc8   :  { %v749_v12 = vadd.f32 %v748_v24, %v709_v32  ;;  %937 = vmatmul.bf16.gmra.mxu2 %v2521_v38  ;;  %1015 = vmatmul.bf16.gmra.mxu0 %v2753_v63 }
  0xc9   :  { %976 = vmatmul.bf16.gmra.mxu3 %v2749_v61 }
  0xca   :  { %2007 = vmatmul.msk.bf16.gmra.mxu1 %vm671_vm0, %v2751_v62 }
  0xcb   :  { %v724_v16 = vpop.f32.mrf.mxu2 }
  0xcc   :  { %v763_v17 = vpop.f32.mrf.mxu3 }
  0xcd   :  { %v2978_v35 = vadd.f32 %v763_v17, %v724_v16  ;;  %v711_v13 = vpop.f32.mrf.mxu0 }
  0xcf   :  { %v750_v14 = vpop.f32.mrf.mxu1 }
  0xd0   :  { %v751_v15 = vadd.f32 %v750_v14, %v711_v13 }
  0xd3   :  { %v726_v20 = vpop.f32.mrf.mxu2 }
  0xd4   :  { %v765_v21 = vpop.f32.mrf.mxu3 }
  0xd5   :  { %v2980_v27 = vadd.f32 %v765_v21, %v726_v20  ;;  %v855_v28 = vpop.f32.mrf.mxu0 }
  0xd7   :  { %v2982_v38 = vpop.f32.mrf.mxu1 }
  0xd8   :  { %942 = vmatmul.bf16.gmra.mxu2 %v2639_v48  ;;  %1020 = vmatmul.bf16.gmra.mxu0 %v2818_v52 }
  0xd9   :  { %981 = vmatmul.bf16.gmra.mxu3 %v2814_v49 }
  0xda   :  { %2008 = vmatmul.msk.bf16.gmra.mxu1 %vm671_vm0, %v2816_v50 }
  0xdb   :  { %v777_v61 = vpop.f32.mrf.mxu2 }
  0xdc   :  { %v778_v62 = vadd.f32 %v777_v61, %v739_v42  ;;  %v816_v63 = vpop.f32.mrf.mxu3 }
  0xdd   :  { %v857_v29 = vpop.f32.mrf.mxu0 }
  0xde   :  { %v817_v31 = vadd.f32 %v816_v63, %v778_v62 }
  0xdf   :  { %v2989_v30 = vpop.f32.mrf.mxu1 }
  0xe0   :  { %v2991_v19 = vadd.f32 %v855_v28, %v817_v31 }
  0xe3   :  { %v779_v33 = vpop.f32.mrf.mxu2 }
  0xe4   :  { %v780_v34 = vadd.f32 %v779_v33, %v741_v53  ;;  %v818_v36 = vpop.f32.mrf.mxu3 }
  0xe5   :  { %v860_v48 = vpop.f32.mrf.mxu0 }
  0xe6   :  { %v819_v40 = vadd.f32 %v818_v36, %v780_v34 }
  0xe7   :  { %v2993_v52 = vpop.f32.mrf.mxu1 }
  0xe8   :  { %v2995_v49 = vadd.f32 %v857_v29, %v819_v40  ;;  %947 = vmatmul.bf16.gmra.mxu2 %v2397_v23  ;;  %1025 = vmatmul.bf16.gmra.mxu0 %v2865_v26 }
  0xe9   :  { %986 = vmatmul.bf16.gmra.mxu3 %v2861_v22 }
  0xea   :  { %2009 = vmatmul.msk.bf16.gmra.mxu1 %vm671_vm0, %v2863_v25 }
  0xeb   :  { %v782_v50 = vpop.f32.mrf.mxu2 }
  0xec   :  { %v783_v18 = vadd.f32 %v782_v50, %v744_v59  ;;  %v821_v42 = vpop.f32.mrf.mxu3 }
  0xed   :  { %v862_v0 = vpop.f32.mrf.mxu0 }
  0xee   :  { %v822_v6 = vadd.f32 %v821_v42, %v783_v18 }
  0xef   :  { %v3002_v43 = vpop.f32.mrf.mxu1 }
  0xf0   :  { %v3004_v51 = vadd.f32 %v860_v48, %v822_v6 }
  0xf3   :  { %v784_v53 = vpop.f32.mrf.mxu2 }
  0xf4   :  { %v785_v54 = vadd.f32 %v784_v53, %v746_v3  ;;  %v823_v55 = vpop.f32.mrf.mxu3 }
  0xf5   :  { %v865_v23 = vpop.f32.mrf.mxu0 }
  0xf6   :  { %v824_v57 = vadd.f32 %v823_v55, %v785_v54 }
  0xf7   :  { %v3006_v26 = vpop.f32.mrf.mxu1 }
  0xf8   :  { %v3008_v22 = vadd.f32 %v862_v0, %v824_v57  ;;  %952 = vmatmul.bf16.gmra.mxu2 %v2519_v37  ;;  %1030 = vmatmul.bf16.gmra.mxu0 %v2918_v7 }
  0xf9   :  { %991 = vmatmul.bf16.gmra.mxu3 %v2914_v4 }
  0xfa   :  { %2010 = vmatmul.msk.bf16.gmra.mxu1 %vm671_vm0, %v2916_v5 }
  0xfb   :  { %v787_v25 = vpop.f32.mrf.mxu2 }
  0xfc   :  { %v788_v58 = vadd.f32 %v787_v25, %v749_v12  ;;  %v826_v59 = vpop.f32.mrf.mxu3 }
  0xfd   :  { %v867_v44 = vpop.f32.mrf.mxu0 }
  0xfe   :  { %v827_v60 = vadd.f32 %v826_v59, %v788_v58 }
  0xff   :  { %v3015_v45 = vpop.f32.mrf.mxu1 }
 0x100   :  { %v3017_v2 = vadd.f32 %v865_v23, %v827_v60 }
 0x103   :  { %v789_v3 = vpop.f32.mrf.mxu2 }
 0x104   :  { %v790_v8 = vadd.f32 %v789_v3, %v751_v15  ;;  %v828_v10 = vpop.f32.mrf.mxu3 }
 0x105   :  { %v870_v37 = vpop.f32.mrf.mxu0 }
 0x106   :  { %v829_v32 = vadd.f32 %v828_v10, %v790_v8 }
 0x107   :  { %v3019_v7 = vpop.f32.mrf.mxu1 }
 0x108   :  { %v3021_v4 = vadd.f32 %v867_v44, %v829_v32  ;;  %957 = vmatmul.bf16.gmra.mxu2 %v2637_v47  ;;  %1035 = vmatmul.bf16.gmra.mxu0 %v2953_v41 }
 0x109   :  { %996 = vmatmul.bf16.gmra.mxu3 %v2949_v39 }
 0x10a   :  { %2011 = vmatmul.msk.bf16.gmra.mxu1 %vm671_vm0, %v2951_v46 }
 0x10b   :  { %v792_v5 = vpop.f32.mrf.mxu2 }
 0x10c   :  { %v793_v24 = vadd.f32 %v792_v5, %v2960_v9  ;;  %v831_v12 = vpop.f32.mrf.mxu3 }
 0x10d   :  { %v872_v16 = vpop.f32.mrf.mxu0 }
 0x10e   :  { %v832_v17 = vadd.f32 %v831_v12, %v793_v24 }
 0x10f   :  { %v3029_v13 = vpop.f32.mrf.mxu1 }
 0x110   :  { %v3031_v14 = vadd.f32 %v870_v37, %v832_v17 }
 0x113   :  { %v794_v15 = vpop.f32.mrf.mxu2 }
 0x114   :  { %v795_v47 = vadd.f32 %v794_v15, %v2962_v56  ;;  %v833_v20 = vpop.f32.mrf.mxu3 }
 0x115   :  { %v875_v41 = vpop.f32.mrf.mxu0 }
 0x116   :  { %v834_v21 = vadd.f32 %v833_v20, %v795_v47 }
 0x117   :  { %v3034_v39 = vpop.f32.mrf.mxu1 }
 0x118   :  { %v3036_v28 = vadd.f32 %v872_v16, %v834_v21 }
 0x11b   :  { %v797_v46 = vpop.f32.mrf.mxu2 }
 0x11c   :  { %v798_v9 = vadd.f32 %v797_v46, %v2969_v1  ;;  %v836_v61 = vpop.f32.mrf.mxu3 }
 0x11d   :  { %v877_v62 = vpop.f32.mrf.mxu0 }
 0x11e   :  { %v837_v63 = vadd.f32 %v836_v61, %v798_v9 }
 0x11f   :  { %v3039_v29 = vpop.f32.mrf.mxu1 }
 0x120   :  { %v3041_v31 = vadd.f32 %v875_v41, %v837_v63 }
 0x123   :  { %v799_v33 = vpop.f32.mrf.mxu2 }
 0x124   :  { %v800_v56 = vadd.f32 %v799_v33, %v2971_v11  ;;  %v838_v34 = vpop.f32.mrf.mxu3 }
 0x125   :  { %v880_v36 = vpop.f32.mrf.mxu0 }
 0x126   :  { %v839_v48 = vadd.f32 %v838_v34, %v800_v56  ;;  %v1131_v56 = vmul.f32 %v2995_v49, %v2995_v49 }
 0x127   :  { %v3044_v40 = vpop.f32.mrf.mxu1 }
 0x128   :  { %v3046_v50 = vadd.f32 %v877_v62, %v839_v48 }
 0x12b   :  { %v802_v18 = vpop.f32.mrf.mxu2 }
 0x12c   :  { %v803_v1 = vadd.f32 %v802_v18, %v2978_v35  ;;  %v841_v42 = vpop.f32.mrf.mxu3 }
 0x12d   :  { %v882_v0 = vpop.f32.mrf.mxu0 }
 0x12e   :  { %v842_v6 = vadd.f32 %v841_v42, %v803_v1 }
 0x12f   :  { %v3049_v53 = vpop.f32.mrf.mxu1 }
 0x130   :  { %v3051_v54 = vadd.f32 %v880_v36, %v842_v6 }
 0x133   :  { %v804_v55 = vpop.f32.mrf.mxu2 }
 0x134   :  { %v805_v11 = vadd.f32 %v804_v55, %v2980_v27  ;;  %v843_v23 = vpop.f32.mrf.mxu3 }
 0x135   :  { %v1011_v57 = vpop.f32.mrf.mxu0 }
 0x136   :  { %v844_v25 = vadd.f32 %v843_v23, %v805_v11 }
 0x137   :  { %v1050_v58 = vpop.f32.mrf.mxu1 }
 0x138   :  { %v3054_v59 = vadd.f32 %v882_v0, %v844_v25 }
 0x13b   :  { %v933_v44 = vpop.f32.mrf.mxu2 }
 0x13c   :  { %v934_v60 = vadd.f32 %v933_v44, %v2982_v38  ;;  %v972_v35 = vpop.f32.mrf.mxu3 }
 0x13d   :  { %v1013_v3 = vpop.f32.mrf.mxu0 }
 0x13e   :  { %v973_v8 = vadd.f32 %v972_v35, %v934_v60 }
 0x13f   :  { %v1052_v10 = vpop.f32.mrf.mxu1 }
 0x140   :  { %v1012_v37 = vadd.f32 %v1011_v57, %v973_v8 }
 0x142   :  { %v3057_v32 = vadd.f32 %v1050_v58, %v1012_v37  ;;  %v1133_v58 = vmul.f32 %v3004_v51, %v3004_v51 }
 0x143   :  { %v935_v5 = vpop.f32.mrf.mxu2 }
 0x144   :  { %v936_v27 = vadd.f32 %v935_v5, %v2989_v30  ;;  %v974_v24 = vpop.f32.mrf.mxu3  ;;  %v1081_v12 = vsel %vm1080_vm1, %v3057_v32, 0.0  ;;  %v1130_v47 = vmul.f32 %v3057_v32, %v3057_v32  ;;  %v1129_v30 = vmul.f32 %v2991_v19, %v2991_v19 }
 0x145   :  { %v1016_v16 = vpop.f32.mrf.mxu0  ;;  %v1082_v17 = vadd.f32 %v1081_v12, %v2991_v19 }
 0x146   :  { %v975_v15 = vadd.f32 %v974_v24, %v936_v27  ;;  %v1153_v21 = vsel %vm1080_vm1, %v1130_v47, 0.0 }
 0x147   :  { %v1055_v38 = vpop.f32.mrf.mxu1  ;;  %1083 = vadd.xlane.f32.xlu0 %v1082_v17  ;;  %v1154_v33 = vadd.f32 %v1153_v21, %v1129_v30  ;;  %v1135_v17 = vmul.f32 %v3008_v22, %v3008_v22 }
 0x148   :  { %v1014_v20 = vadd.f32 %v1013_v3, %v975_v15 }
 0x14a   :  { %v3065_v41 = vadd.f32 %v1052_v10, %v1014_v20 }
 0x14b   :  { %v938_v46 = vpop.f32.mrf.mxu2 }
 0x14c   :  { %v939_v9 = vadd.f32 %v938_v46, %v2993_v52  ;;  %v977_v61 = vpop.f32.mrf.mxu3  ;;  %v1132_v62 = vmul.f32 %v3065_v41, %v3065_v41  ;;  %v1085_v52 = vsel %vm1080_vm1, %v3065_v41, 0.0 }
 0x14d   :  { %v1018_v63 = vpop.f32.mrf.mxu0  ;;  %v1086_v25 = vadd.f32 %v1085_v52, %v2995_v49 }
 0x14e   :  { %v978_v34 = vadd.f32 %v977_v61, %v939_v9  ;;  %v1157_v48 = vsel %vm1080_vm1, %v1132_v62, 0.0 }
 0x14f   :  { %v1057_v36 = vpop.f32.mrf.mxu1  ;;  %1155 = vadd.xlane.f32.xlu0 %v1154_v33  ;;  %v1158_v18 = vadd.f32 %v1157_v48, %v1131_v56 }
 0x150   :  { %v1017_v1 = vadd.f32 %v1016_v16, %v978_v34  ;;  %v1137_v34 = vmul.f32 %v3017_v2, %v3017_v2 }
 0x151   :  { %1159 = vadd.xlane.f32.xlu1 %v1158_v18 }
 0x152   :  { %v3076_v42 = vadd.f32 %v1055_v38, %v1017_v1 }
 0x153   :  { %v940_v0 = vpop.f32.mrf.mxu2 }
 0x154   :  { %v941_v6 = vadd.f32 %v940_v0, %v3002_v43  ;;  %v979_v55 = vpop.f32.mrf.mxu3  ;;  %v1134_v11 = vmul.f32 %v3076_v42, %v3076_v42  ;;  %v1089_v23 = vsel %vm1080_vm1, %v3076_v42, 0.0 }
 0x155   :  { %v1021_v57 = vpop.f32.mrf.mxu0  ;;  %v1090_v43 = vadd.f32 %v1089_v23, %v3004_v51 }
 0x156   :  { %v980_v44 = vadd.f32 %v979_v55, %v941_v6  ;;  %v1161_v35 = vsel %vm1080_vm1, %v1134_v11, 0.0 }
 0x157   :  { %v1060_v60 = vpop.f32.mrf.mxu1  ;;  %1087 = vadd.xlane.f32.xlu0 %v1086_v25  ;;  %v1162_v3 = vadd.f32 %v1161_v35, %v1133_v58 }
 0x158   :  { %v1019_v8 = vadd.f32 %v1018_v63, %v980_v44 }
 0x159   :  { %1163 = vadd.xlane.f32.xlu2 %v1162_v3  ;;  %1091 = vadd.xlane.f32.xlu1 %v1090_v43 }
 0x15a   :  { %v3090_v10 = vadd.f32 %v1057_v36, %v1019_v8 }
 0x15b   :  { %v943_v37 = vpop.f32.mrf.mxu2 }
 0x15c   :  { %v944_v5 = vadd.f32 %v943_v37, %v3006_v26  ;;  %v982_v27 = vpop.f32.mrf.mxu3  ;;  %v1093_v24 = vsel %vm1080_vm1, %v3090_v10, 0.0  ;;  %v1136_v12 = vmul.f32 %v3090_v10, %v3090_v10 }
 0x15d   :  { %v1023_v16 = vpop.f32.mrf.mxu0  ;;  %v1094_v20 = vadd.f32 %v1093_v24, %v3008_v22 }
 0x15e   :  { %v983_v15 = vadd.f32 %v982_v27, %v944_v5  ;;  %v1165_v47 = vsel %vm1080_vm1, %v1136_v12, 0.0 }
 0x15f   :  { %v1062_v38 = vpop.f32.mrf.mxu1  ;;  %v1166_v21 = vadd.f32 %v1165_v47, %v1135_v17 }
 0x160   :  { %v1022_v46 = vadd.f32 %v1021_v57, %v983_v15 }
 0x161   :  { %1095 = vadd.xlane.f32.xlu1 %v1094_v20  ;;  %1167 = vadd.xlane.f32.xlu0 %v1166_v21  ;;  %v1141_v21 = vmul.f32 %v3031_v14, %v3031_v14 }
 0x162   :  { %v3101_v26 = vadd.f32 %v1060_v60, %v1022_v46 }
 0x163   :  { %v945_v30 = vpop.f32.mrf.mxu2 }
 0x164   :  { %v946_v9 = vadd.f32 %v945_v30, %v3015_v45  ;;  %v984_v61 = vpop.f32.mrf.mxu3  ;;  %v1097_v62 = vsel %vm1080_vm1, %v3101_v26, 0.0  ;;  %v1138_v63 = vmul.f32 %v3101_v26, %v3101_v26 }
 0x165   :  { %v1026_v33 = vpop.f32.mrf.mxu0  ;;  %v1098_v56 = vadd.f32 %v1097_v62, %v3017_v2 }
 0x166   :  { %v985_v36 = vadd.f32 %v984_v61, %v946_v9  ;;  %v1169_v48 = vsel %vm1080_vm1, %v1138_v63, 0.0 }
 0x167   :  { %1099 = vadd.xlane.f32.xlu2 %v1098_v56  ;;  %v1065_v18 = vpop.f32.mrf.mxu1  ;;  %v1170_v1 = vadd.f32 %v1169_v48, %v1137_v34 }
 0x168   :  { %v1024_v45 = vadd.f32 %v1023_v16, %v985_v36 }
 0x169   :  { %1171 = vadd.xlane.f32.xlu1 %v1170_v1 }
 0x16a   :  { %v3112_v52 = vadd.f32 %v1062_v38, %v1024_v45 }
 0x16b   :  { %v948_v0 = vpop.f32.mrf.mxu2 }
 0x16c   :  { %v949_v6 = vadd.f32 %v948_v0, %v3019_v7  ;;  %v987_v55 = vpop.f32.mrf.mxu3  ;;  %v1101_v11 = vsel %vm1080_vm1, %v3112_v52, 0.0  ;;  %v1140_v25 = vmul.f32 %v3112_v52, %v3112_v52  ;;  %v1139_v7 = vmul.f32 %v3021_v4, %v3021_v4 }
 0x16d   :  { %v1102_v23 = vadd.f32 %v1101_v11, %v3021_v4  ;;  %v1028_v58 = vpop.f32.mrf.mxu0 }
 0x16e   :  { %v988_v57 = vadd.f32 %v987_v55, %v949_v6  ;;  %v1173_v3 = vsel %vm1080_vm1, %v1140_v25, 0.0 }
 0x16f   :  { %1103 = vadd.xlane.f32.xlu2 %v1102_v23  ;;  %v1067_v60 = vpop.f32.mrf.mxu1  ;;  %v1174_v24 = vadd.f32 %v1173_v3, %v1139_v7 }
 0x170   :  { %v1027_v44 = vadd.f32 %v1026_v33, %v988_v57 }
 0x172   :  { %v3120_v35 = vadd.f32 %v1065_v18, %v1027_v44  ;;  %v1143_v18 = vmul.f32 %v3036_v28, %v3036_v28 }
 0x173   :  { %v950_v43 = vpop.f32.mrf.mxu2 }
 0x174   :  { %v951_v8 = vadd.f32 %v950_v43, %v3029_v13  ;;  %v989_v37 = vpop.f32.mrf.mxu3  ;;  %v1105_v5 = vsel %vm1080_vm1, %v3120_v35, 0.0  ;;  %v1142_v16 = vmul.f32 %v3120_v35, %v3120_v35 }
 0x175   :  { %v1106_v27 = vadd.f32 %v1105_v5, %v3031_v14  ;;  %v1031_v15 = vpop.f32.mrf.mxu0 }
 0x176   :  { %v990_v12 = vadd.f32 %v989_v37, %v951_v8  ;;  %v1177_v47 = vsel %vm1080_vm1, %v1142_v16, 0.0 }
 0x177   :  { %1107 = vadd.xlane.f32.xlu0 %v1106_v27  ;;  %1175 = vadd.xlane.f32.xlu2 %v1174_v24  ;;  %v1070_v13 = vpop.f32.mrf.mxu1  ;;  %v1178_v62 = vadd.f32 %v1177_v47, %v1141_v21  ;;  %v1147_v47 = vmul.f32 %v3046_v50, %v3046_v50 }
 0x178   :  { %v1029_v17 = vadd.f32 %v1028_v58, %v990_v12 }
 0x17a   :  { %v3131_v38 = vadd.f32 %v1067_v60, %v1029_v17  ;;  %v1145_v60 = vmul.f32 %v3041_v31, %v3041_v31 }
 0x17b   :  { %v953_v20 = vpop.f32.mrf.mxu2 }
 0x17c   :  { %v954_v46 = vadd.f32 %v953_v20, %v3034_v39  ;;  %v992_v30 = vpop.f32.mrf.mxu3  ;;  %v1109_v9 = vsel %vm1080_vm1, %v3131_v38, 0.0  ;;  %v1144_v33 = vmul.f32 %v3131_v38, %v3131_v38 }
 0x17d   :  { %v1110_v61 = vadd.f32 %v1109_v9, %v3036_v28  ;;  %v1033_v48 = vpop.f32.mrf.mxu0 }
 0x17e   :  { %v993_v63 = vadd.f32 %v992_v30, %v954_v46  ;;  %v1181_v36 = vsel %vm1080_vm1, %v1144_v33, 0.0 }
 0x17f   :  { %1111 = vadd.xlane.f32.xlu1 %v1110_v61  ;;  %1179 = vadd.xlane.f32.xlu0 %v1178_v62  ;;  %v1072_v6 = vpop.f32.mrf.mxu1  ;;  %v1182_v55 = vadd.f32 %v1181_v36, %v1143_v18  ;;  %v1149_v36 = vmul.f32 %v3051_v54, %v3051_v54 }
 0x180   :  { %v1032_v56 = vadd.f32 %v1031_v15, %v993_v63 }
 0x182   :  { %v3142_v34 = vadd.f32 %v1070_v13, %v1032_v56 }
 0x183   :  { %v955_v39 = vpop.f32.mrf.mxu2 }
 0x184   :  { %v956_v1 = vadd.f32 %v955_v39, %v3039_v29  ;;  %v994_v45 = vpop.f32.mrf.mxu3  ;;  %v1113_v0 = vsel %vm1080_vm1, %v3142_v34, 0.0  ;;  %v1146_v57 = vmul.f32 %v3142_v34, %v3142_v34 }
 0x185   :  { %v1114_v11 = vadd.f32 %v1113_v0, %v3041_v31  ;;  %v1036_v8 = vpop.f32.mrf.mxu0  ;;  %v1151_v0 = vmul.f32 %v3054_v59, %v3054_v59 }
 0x186   :  { %v995_v23 = vadd.f32 %v994_v45, %v956_v1  ;;  %v1185_v44 = vsel %vm1080_vm1, %v1146_v57, 0.0 }
 0x187   :  { %1183 = vadd.xlane.f32.xlu1 %v1182_v55  ;;  %1115 = vadd.xlane.f32.xlu2 %v1114_v11  ;;  %v1186_v5 = vadd.f32 %v1185_v44, %v1145_v60  ;;  %v1075_v12 = vpop.f32.mrf.mxu1 }
 0x188   :  { %v1034_v25 = vadd.f32 %v1033_v48, %v995_v23  ;;  %v2187_v23 = vmov 0  }
 0x189   :  { %2105 = vset.pattern.permute.xlu0 %v2187_v23  ;;  %2106 = vset.pattern.permute.xlu1 %v2187_v23 }
 0x18a   :  { %v3153_v58 = vadd.f32 %v1072_v6, %v1034_v25  ;;  %2107 = vset.pattern.permute.xlu2 %v2187_v23 }
 0x18b   :  { %v958_v29 = vpop.f32.mrf.mxu2 }
 0x18c   :  { %v959_v3 = vadd.f32 %v958_v29, %v3044_v40  ;;  %v997_v43 = vpop.f32.mrf.mxu3  ;;  %v1117_v7 = vsel %vm1080_vm1, %v3153_v58, 0.0  ;;  %v1148_v24 = vmul.f32 %v3153_v58, %v3153_v58 }
 0x18d   :  { %v1118_v37 = vadd.f32 %v1117_v7, %v3046_v50  ;;  %v1038_v62 = vpop.f32.mrf.mxu0 }
 0x18e   :  { %v998_v27 = vadd.f32 %v997_v43, %v959_v3  ;;  %v1189_v40 = vsel %vm1080_vm1, %v1148_v24, 0.0 }
 0x18f   :  { %1119 = vadd.xlane.f32.xlu0 %v1118_v37  ;;  %1187 = vadd.xlane.f32.xlu2 %v1186_v5  ;;  %v1190_v30 = vadd.f32 %v1189_v40, %v1147_v47  ;;  %v1077_v33 = vpop.f32.mrf.mxu1 }
 0x190   :  { %v1037_v16 = vadd.f32 %v1036_v8, %v998_v27 }
 0x192   :  { %v3164_v17 = vadd.f32 %v1075_v12, %v1037_v16 }
 0x193   :  { %v960_v15 = vpop.f32.mrf.mxu2 }
 0x194   :  { %v961_v13 = vadd.f32 %v960_v15, %v3049_v53  ;;  %v1121_v20 = vsel %vm1080_vm1, %v3164_v17, 0.0  ;;  %v999_v21 = vpop.f32.mrf.mxu3  ;;  %v1150_v61 = vmul.f32 %v3164_v17, %v3164_v17 }
 0x195   :  { %v1122_v46 = vadd.f32 %v1121_v20, %v3051_v54 }
 0x196   :  { %v1000_v9 = vadd.f32 %v999_v21, %v961_v13  ;;  %v1193_v53 = vsel %vm1080_vm1, %v1150_v61, 0.0 }
 0x197   :  { %1123 = vadd.xlane.f32.xlu1 %v1122_v46  ;;  %1191 = vadd.xlane.f32.xlu0 %v1190_v30  ;;  %v1194_v39 = vadd.f32 %v1193_v53, %v1149_v36 }
 0x198   :  { %v1039_v63 = vadd.f32 %v1038_v62, %v1000_v9 }
 0x19a   :  { %v3175_v56 = vadd.f32 %v1077_v33, %v1039_v63 }
 0x19c   :  { %v1125_v48 = vsel %vm1080_vm1, %v3175_v56, 0.0  ;;  %v1152_v1 = vmul.f32 %v3175_v56, %v3175_v56 }
 0x19d   :  { %v1126_v18 = vadd.f32 %v1125_v48, %v3054_v59 }
 0x19e   :  { %v1197_v45 = vsel %vm1080_vm1, %v1152_v1, 0.0 }
 0x19f   :  { %1195 = vadd.xlane.f32.xlu1 %v1194_v39  ;;  %1127 = vadd.xlane.f32.xlu2 %v1126_v18  ;;  %v1198_v6 = vadd.f32 %v1197_v45, %v1151_v0  ;;  %v1393_v0 = vld [vmem:[%s3375_s3] sm:$0xff] }
 0x1a7   :  { %1199 = vadd.xlane.f32.xlu2 %v1198_v6 }
 0x1ba   :  { %v1084_v55 = vpop.xlane.xlu0 %1083 }
 0x1bb   :  { %v3188_v11 = vmul.f32 0.0051020407, %v1084_v55 }
 0x1bd   :  { %v1225_v25 = vmul.f32 %v3188_v11, %v3188_v11 }
 0x1c2   :  { %v1156_v57 = vpop.xlane.xlu0 %1155 }
 0x1c3   :  { %v1213_v44 = vmul.f32 0.0051020407, %v1156_v57 }
 0x1c4   :  { %v1160_v29 = vpop.xlane.xlu1 %1159 }
 0x1c5   :  { %v1237_v60 = vsub.f32 %v1213_v44, %v1225_v25  ;;  %v1214_v27 = vmul.f32 0.0051020407, %v1160_v29 }
 0x1c7   :  { %v1249_v3 = vmax.f32 %v1237_v60, 0.0 }
 0x1c9   :  { %v1261_v43 = vadd.f32 1e-05, %v1249_v3 }
 0x1ca   :  { %v1088_v7 = vpop.xlane.xlu0 %1087 }
 0x1cb   :  { %2108 = vrsqrt.f32 %v1261_v43  ;;  %v3192_v8 = vmul.f32 0.0051020407, %v1088_v7  ;;  %vm1279_vm3 = vweird.f32 %v1261_v43 }
 0x1cc   :  { %v1164_v37 = vpop.xlane.xlu2 %1163  ;;  %v1092_v5 = vpop.xlane.xlu1 %1091 }
 0x1cd   :  { %v1226_v24 = vmul.f32 %v3192_v8, %v3192_v8  ;;  %v3196_v12 = vmul.f32 0.0051020407, %v1092_v5  ;;  %v1215_v40 = vmul.f32 0.0051020407, %v1164_v37 }
 0x1cf   :  { %v1238_v16 = vsub.f32 %v1214_v27, %v1226_v24  ;;  %v1227_v15 = vmul.f32 %v3196_v12, %v3196_v12  ;;  %v1417_v27 = vld [vmem:[%s3376_s4] sm:$0xff] }
 0x1d1   :  { %v2109_v47 = vpop.eup %2108  ;;  %v1250_v13 = vmax.f32 %v1238_v16, 0.0  ;;  %v1239_v20 = vsub.f32 %v1215_v40, %v1227_v15 }
 0x1d2   :  { %v1274_v21 = vmul.f32 %v2109_v47, %v1261_v43  ;;  %vm1280_vm2 = vweird.f32 %v2109_v47 }
 0x1d3   :  { %v1262_v46 = vadd.f32 1e-05, %v1250_v13  ;;  %v1251_v30 = vmax.f32 %v1239_v20, 0.0  ;;  %vm1281_vm4 = vmor %vm1279_vm3, %vm1280_vm2 }
 0x1d4   :  { %v1275_v9 = vmul.f32 %v2109_v47, %v1274_v21  ;;  %v1096_v61 = vpop.xlane.xlu1 %1095  ;;  %v1168_v62 = vpop.xlane.xlu0 %1167 }
 0x1d5   :  { %2110 = vrsqrt.f32 %v1262_v46  ;;  %v1263_v63 = vadd.f32 1e-05, %v1251_v30  ;;  %v3200_v33 = vmul.f32 0.0051020407, %v1096_v61  ;;  %v1216_v48 = vmul.f32 0.0051020407, %v1168_v62 }
 0x1d6   :  { %v1276_v53 = vmul.f32 0.5, %v1275_v9  ;;  %v1394_v61 = vld [vmem:[%s3375_s3 + $0x8] sm:$0xff]  ;;  %vm1289_vm6 = vweird.f32 %v1262_v46 }
 0x1d7   :  { %2112 = vrsqrt.f32 %v1263_v63  ;;  %v1228_v36 = vmul.f32 %v3200_v33, %v3200_v33  ;;  %vm1299_vm9 = vweird.f32 %v1263_v63 }
 0x1d8   :  { %v1277_v39 = vsub.f32 1.5, %v1276_v53 }
 0x1d9   :  { %v1240_v18 = vsub.f32 %v1216_v48, %v1228_v36  ;;  %v1395_v48 = vld [vmem:[%s3375_s3 + $0x10] sm:$0xff] }
 0x1da   :  { %v1100_v1 = vpop.xlane.xlu2 %1099  ;;  %v1278_v45 = vmul.f32 %v2109_v47, %v1277_v39 }
 0x1db   :  { %v2111_v6 = vpop.eup %2110  ;;  %v1252_v55 = vmax.f32 %v1240_v18, 0.0  ;;  %v3207_v23 = vmul.f32 0.0051020407, %v1100_v1 }
 0x1dc   :  { %v1284_v57 = vmul.f32 %v2111_v6, %v1262_v46  ;;  %v1172_v25 = vpop.xlane.xlu1 %1171  ;;  %v1282_v44 = vsel %vm1281_vm4, %v2109_v47, %v1278_v45  ;;  %vm1290_vm5 = vweird.f32 %v2111_v6 }
 0x1dd   :  { %v2113_v29 = vpop.eup %2112  ;;  %v1264_v60 = vadd.f32 1e-05, %v1252_v55  ;;  %v1229_v3 = vmul.f32 %v3207_v23, %v3207_v23  ;;  %v1217_v43 = vmul.f32 0.0051020407, %v1172_v25  ;;  %v1405_v7 = vmul.f32 %v1393_v0, %v1282_v44  ;;  %vm1291_vm8 = vmor %vm1289_vm6, %vm1290_vm5  ;;  %v1418_v55 = vld [vmem:[%s3376_s4 + $0x8] sm:$0xff] }
 0x1de   :  { %v1285_v37 = vmul.f32 %v2111_v6, %v1284_v57  ;;  %v1294_v5 = vmul.f32 %v2113_v29, %v1263_v63  ;;  %vm1300_vm7 = vweird.f32 %v2113_v29 }
 0x1df   :  { %2114 = vrsqrt.f32 %v1264_v60  ;;  %v1241_v24 = vsub.f32 %v1217_v43, %v1229_v3  ;;  %1479 = vperm.xlu0 %2105, %v1405_v7   ;;  %v1429_v16 = vmul.f32 %v1405_v7, %v3188_v11  ;;  %vm1301_vm10 = vmor %vm1299_vm9, %vm1300_vm7  ;;  %vm1309_vm12 = vweird.f32 %v1264_v60 }
 0x1e0   :  { %v1286_v40 = vmul.f32 0.5, %v1285_v37  ;;  %v1295_v15 = vmul.f32 %v2113_v29, %v1294_v5 }
 0x1e1   :  { %v1253_v47 = vmax.f32 %v1241_v24, 0.0  ;;  %v1441_v13 = vsub.f32 %v1417_v27, %v1429_v16 }
 0x1e2   :  { %v1287_v20 = vsub.f32 1.5, %v1286_v40  ;;  %v1296_v21 = vmul.f32 0.5, %v1295_v15  ;;  %v1104_v30 = vpop.xlane.xlu2 %1103  ;;  %v1419_v40 = vld [vmem:[%s3376_s4 + $0x10] sm:$0xff]  ;;  %v1396_v15 = vld [vmem:[%s3375_s3 + $0x18] sm:$0xff] }
 0x1e3   :  { %v3215_v9 = vadd.f32 1e-05, %v1253_v47  ;;  %1563 = vperm.xlu1 %2106, %v1441_v13   ;;  %v3224_v45 = vmul.f32 0.0051020407, %v1104_v30 }
 0x1e4   :  { %v1288_v62 = vmul.f32 %v2111_v6, %v1287_v20  ;;  %v1297_v53 = vsub.f32 1.5, %v1296_v21 }
 0x1e5   :  { %v2115_v11 = vpop.eup %2114  ;;  %2116 = vrsqrt.f32 %v3215_v9  ;;  %v1230_v63 = vmul.f32 %v3224_v45, %v3224_v45  ;;  %vm1319_vm15 = vweird.f32 %v3215_v9 }
 0x1e6   :  { %v1292_v36 = vsel %vm1291_vm8, %v2111_v6, %v1288_v62  ;;  %v1298_v39 = vmul.f32 %v2113_v29, %v1297_v53  ;;  %v1304_v18 = vmul.f32 %v2115_v11, %v1264_v60  ;;  %vm1310_vm11 = vweird.f32 %v2115_v11 }
 0x1e7   :  { %v1406_v1 = vmul.f32 %v1394_v61, %v1292_v36  ;;  %vm1311_vm13 = vmor %vm1309_vm12, %vm1310_vm11 }
 0x1e8   :  { %v1302_v0 = vsel %vm1301_vm10, %v2113_v29, %v1298_v39  ;;  %v1305_v46 = vmul.f32 %v2115_v11, %v1304_v18  ;;  %v1420_v39 = vld [vmem:[%s3376_s4 + $0x18] sm:$0xff] }
 0x1e9   :  { %v1430_v57 = vmul.f32 %v1406_v1, %v3192_v8  ;;  %v1407_v6 = vmul.f32 %v1395_v48, %v1302_v0 }
 0x1ea   :  { %v1306_v25 = vmul.f32 0.5, %v1305_v46  ;;  %v1108_v44 = vpop.xlane.xlu0 %1107  ;;  %v1176_v3 = vpop.xlane.xlu2 %1175 }
 0x1eb   :  { %v2117_v43 = vpop.eup %2116  ;;  %v1218_v7 = vmul.f32 0.0051020407, %v1176_v3  ;;  %1484 = vperm.xlu1 %2106, %v1406_v1   ;;  %1489 = vperm.xlu2 %2107, %v1407_v6   ;;  %v1442_v37 = vsub.f32 %v1418_v55, %v1430_v57  ;;  %v1431_v27 = vmul.f32 %v1407_v6, %v3196_v12  ;;  %v3240_v47 = vmul.f32 0.0051020407, %v1108_v44  ;;  %v1397_v1 = vld [vmem:[%s3375_s3 + $0x20] sm:$0xff] }
 0x1ec   :  { %v1307_v29 = vsub.f32 1.5, %v1306_v25  ;;  %v1314_v5 = vmul.f32 %v2117_v43, %v3215_v9  ;;  %vm1320_vm14 = vweird.f32 %v2117_v43  ;;  %v1421_v9 = vld [vmem:[%s3376_s4 + $0x20] sm:$0xff] }
 0x1ed   :  { %v1242_v24 = vsub.f32 %v1218_v7, %v1230_v63  ;;  %1568 = vperm.xlu0 %2105, %v1442_v37   ;;  %v1443_v30 = vsub.f32 %v1419_v40, %v1431_v27  ;;  %v1231_v36 = vmul.f32 %v3240_v47, %v3240_v47  ;;  %vm1321_vm0 = vmor %vm1319_vm15, %vm1320_vm14 }
 0x1ee   :  { %v1308_v8 = vmul.f32 %v2115_v11, %v1307_v29  ;;  %v1315_v16 = vmul.f32 %v2117_v43, %v1314_v5 }
 0x1ef   :  { %v1254_v13 = vmax.f32 %v1242_v24, 0.0 }
 0x1f0   :  { %v1316_v20 = vmul.f32 0.5, %v1315_v16  ;;  %v1312_v21 = vsel %vm1311_vm13, %v2115_v11, %v1308_v8 }
 0x1f1   :  { %v1266_v12 = vadd.f32 1e-05, %v1254_v13  ;;  %v1408_v61 = vmul.f32 %v1396_v15, %v1312_v21 }
 0x1f2   :  { %v1317_v62 = vsub.f32 1.5, %v1316_v20  ;;  %v1112_v60 = vpop.xlane.xlu1 %1111  ;;  %v1180_v53 = vpop.xlane.xlu0 %1179 }
 0x1f3   :  { %2118 = vrsqrt.f32 %v1266_v12  ;;  %v1219_v48 = vmul.f32 0.0051020407, %v1180_v53  ;;  %1573 = vperm.xlu2 %2107, %v1443_v30   ;;  %v1432_v11 = vmul.f32 %v1408_v61, %v3200_v33  ;;  %v3252_v57 = vmul.f32 0.0051020407, %v1112_v60 }
 0x1f4   :  { %v1318_v18 = vmul.f32 %v2117_v43, %v1317_v62  ;;  %vm1329_vm3 = vweird.f32 %v1266_v12 }
 0x1f5   :  { %v1243_v0 = vsub.f32 %v1219_v48, %v1231_v36  ;;  %v1444_v46 = vsub.f32 %v1420_v39, %v1432_v11  ;;  %v1232_v29 = vmul.f32 %v3252_v57, %v3252_v57 }
 0x1f6   :  { %v1322_v55 = vsel %vm1321_vm0, %v2117_v43, %v1318_v18 }
 0x1f7   :  { %v1255_v6 = vmax.f32 %v1243_v0, 0.0  ;;  %v1409_v25 = vmul.f32 %v1397_v1, %v1322_v55  ;;  %1578 = vperm.xlu1 %2106, %v1444_v46  }
 0x1f9   :  { %v2119_v44 = vpop.eup %2118  ;;  %v1267_v3 = vadd.f32 1e-05, %v1255_v6  ;;  %v1433_v33 = vmul.f32 %v1409_v25, %v3207_v23 }
 0x1fa   :  { %v1324_v63 = vmul.f32 %v2119_v44, %v1266_v12  ;;  %v1184_v7 = vpop.xlane.xlu1 %1183  ;;  %v1116_v37 = vpop.xlane.xlu2 %1115  ;;  %vm1330_vm2 = vweird.f32 %v2119_v44 }
 0x1fb   :  { %2120 = vrsqrt.f32 %v1267_v3  ;;  %v1220_v43 = vmul.f32 0.0051020407, %v1184_v7  ;;  %1494 = vperm.xlu2 %2107, %v1408_v61   ;;  %v1445_v27 = vsub.f32 %v1421_v9, %v1433_v33  ;;  %v3260_v40 = vmul.f32 0.0051020407, %v1116_v37  ;;  %v1398_v61 = vld [vmem:[%s3375_s3 + $0x28] sm:$0xff]  ;;  %vm1331_vm4 = vmor %vm1329_vm3, %vm1330_vm2 }
 0x1fc   :  { %v1325_v5 = vmul.f32 %v2119_v44, %v1324_v63  ;;  %vm1339_vm6 = vweird.f32 %v1267_v3  ;;  %v1422_v7 = vld [vmem:[%s3376_s4 + $0x28] sm:$0xff] }
 0x1fd   :  { %v1244_v24 = vsub.f32 %v1220_v43, %v1232_v29  ;;  %1583 = vperm.xlu0 %2105, %v1445_v27   ;;  %v1233_v60 = vmul.f32 %v3260_v40, %v3260_v40 }
 0x1fe   :  { %v1326_v8 = vmul.f32 0.5, %v1325_v5 }
 0x1ff   :  { %v1256_v16 = vmax.f32 %v1244_v24, 0.0  ;;  %1499 = vperm.xlu1 %2106, %v1409_v25  }
 0x200   :  { %v1327_v15 = vsub.f32 1.5, %v1326_v8 }
 0x201   :  { %v2121_v23 = vpop.eup %2120  ;;  %v1268_v13 = vadd.f32 1e-05, %v1256_v16 }
 0x202   :  { %v1334_v20 = vmul.f32 %v2121_v23, %v1267_v3  ;;  %v1120_v21 = vpop.xlane.xlu0 %1119  ;;  %v1188_v30 = vpop.xlane.xlu2 %1187  ;;  %v1328_v62 = vmul.f32 %v2119_v44, %v1327_v15  ;;  %vm1340_vm5 = vweird.f32 %v2121_v23 }
 0x203   :  { %2122 = vrsqrt.f32 %v1268_v13  ;;  %v1221_v53 = vmul.f32 0.0051020407, %v1188_v30  ;;  %v3267_v12 = vmul.f32 0.0051020407, %v1120_v21  ;;  %vm1341_vm7 = vmor %vm1339_vm6, %vm1340_vm5  ;;  %vm1349_vm9 = vweird.f32 %v1268_v13 }
 0x204   :  { %v1335_v36 = vmul.f32 %v2121_v23, %v1334_v20  ;;  %v1332_v48 = vsel %vm1331_vm4, %v2119_v44, %v1328_v62  ;;  %v1399_v44 = vld [vmem:[%s3375_s3 + $0x30] sm:$0xff] }
 0x205   :  { %v1245_v39 = vsub.f32 %v1221_v53, %v1233_v60  ;;  %v1410_v18 = vmul.f32 %v1398_v61, %v1332_v48  ;;  %v1234_v37 = vmul.f32 %v3267_v12, %v3267_v12  ;;  %v1400_v53 = vld [vmem:[%s3375_s3 + $0x38] sm:$0xff] }
 0x206   :  { %v1336_v11 = vmul.f32 0.5, %v1335_v36  ;;  %v1423_v36 = vld [vmem:[%s3376_s4 + $0x30] sm:$0xff] }
 0x207   :  { %v1257_v1 = vmax.f32 %v1245_v39, 0.0  ;;  %1504 = vperm.xlu2 %2107, %v1410_v18   ;;  %v1434_v6 = vmul.f32 %v1410_v18, %v3224_v45 }
 0x208   :  { %v1337_v0 = vsub.f32 1.5, %v1336_v11 }
 0x209   :  { %v2123_v46 = vpop.eup %2122  ;;  %v3269_v55 = vadd.f32 1e-05, %v1257_v1  ;;  %v1446_v27 = vsub.f32 %v1422_v7, %v1434_v6 }
 0x20a   :  { %v1344_v25 = vmul.f32 %v2123_v46, %v1268_v13  ;;  %v1124_v9 = vpop.xlane.xlu1 %1123  ;;  %v1192_v33 = vpop.xlane.xlu0 %1191  ;;  %v1338_v63 = vmul.f32 %v2121_v23, %v1337_v0  ;;  %vm1350_vm8 = vweird.f32 %v2123_v46 }
 0x20b   :  { %2124 = vrsqrt.f32 %v3269_v55  ;;  %v1222_v29 = vmul.f32 0.0051020407, %v1192_v33  ;;  %v3281_v8 = vmul.f32 0.0051020407, %v1124_v9  ;;  %vm1351_vm10 = vmor %vm1349_vm9, %vm1350_vm8  ;;  %vm1359_vm12 = vweird.f32 %v3269_v55 }
 0x20c   :  { %v1345_v45 = vmul.f32 %v2123_v46, %v1344_v25  ;;  %v1342_v3 = vsel %vm1341_vm7, %v2121_v23, %v1338_v63 }
 0x20d   :  { %v1246_v43 = vsub.f32 %v1222_v29, %v1234_v37  ;;  %v1411_v5 = vmul.f32 %v1399_v44, %v1342_v3  ;;  %v1235_v48 = vmul.f32 %v3281_v8, %v3281_v8 }
 0x20e   :  { %v1346_v24 = vmul.f32 0.5, %v1345_v45  ;;  %v1401_v45 = vld [vmem:[%s3375_s3 + $0x40] sm:$0xff] }
 0x20f   :  { %v1258_v16 = vmax.f32 %v1246_v43, 0.0  ;;  %1509 = vperm.xlu1 %2106, %v1411_v5   ;;  %1588 = vperm.xlu2 %2107, %v1446_v27   ;;  %v1435_v30 = vmul.f32 %v1411_v5, %v3240_v47 }
 0x210   :  { %v1347_v15 = vsub.f32 1.5, %v1346_v24 }
 0x211   :  { %v2125_v20 = vpop.eup %2124  ;;  %v1270_v21 = vadd.f32 1e-05, %v1258_v16  ;;  %v1447_v1 = vsub.f32 %v1423_v36, %v1435_v30  ;;  %v1425_v36 = vld [vmem:[%s3376_s4 + $0x40] sm:$0xff] }
 0x212   :  { %v1354_v62 = vmul.f32 %v2125_v20, %v3269_v55  ;;  %v1196_v61 = vpop.xlane.xlu1 %1195  ;;  %v1128_v23 = vpop.xlane.xlu2 %1127  ;;  %v1348_v60 = vmul.f32 %v2123_v46, %v1347_v15  ;;  %vm1360_vm11 = vweird.f32 %v2125_v20 }
 0x213   :  { %2126 = vrsqrt.f32 %v1270_v21  ;;  %v1223_v39 = vmul.f32 0.0051020407, %v1196_v61  ;;  %v3293_v25 = vmul.f32 0.0051020407, %v1128_v23  ;;  %vm1361_vm13 = vmor %vm1359_vm12, %vm1360_vm11  ;;  %vm1369_vm15 = vweird.f32 %v1270_v21 }
 0x214   :  { %v1355_v47 = vmul.f32 %v2125_v20, %v1354_v62  ;;  %v1352_v13 = vsel %vm1351_vm10, %v2123_v46, %v1348_v60  ;;  %v1424_v46 = vld [vmem:[%s3376_s4 + $0x38] sm:$0xff] }
 0x215   :  { %v1247_v18 = vsub.f32 %v1223_v39, %v1235_v48  ;;  %v1412_v11 = vmul.f32 %v1400_v53, %v1352_v13  ;;  %v1236_v3 = vmul.f32 %v3293_v25, %v3293_v25 }
 0x216   :  { %v1356_v0 = vmul.f32 0.5, %v1355_v47 }
 0x217   :  { %v1259_v6 = vmax.f32 %v1247_v18, 0.0  ;;  %1514 = vperm.xlu0 %2105, %v1412_v11   ;;  %1593 = vperm.xlu1 %2106, %v1447_v1   ;;  %v1436_v44 = vmul.f32 %v1412_v11, %v3252_v57 }
 0x218   :  { %v1357_v9 = vsub.f32 1.5, %v1356_v0 }
 0x219   :  { %v2127_v33 = vpop.eup %2126  ;;  %v1271_v63 = vadd.f32 1e-05, %v1259_v6  ;;  %v1448_v27 = vsub.f32 %v1424_v46, %v1436_v44  ;;  %v1403_v6 = vld [vmem:[%s3375_s3 + $0x50] sm:$0xff] }
 0x21a   :  { %v1364_v7 = vmul.f32 %v2127_v33, %v1270_v21  ;;  %v1200_v37 = vpop.xlane.xlu2 %1199  ;;  %v1358_v29 = vmul.f32 %v2125_v20, %v1357_v9  ;;  %vm1370_vm14 = vweird.f32 %v2127_v33  ;;  %v1426_v9 = vld [vmem:[%s3376_s4 + $0x48] sm:$0xff] }
 0x21b   :  { %2128 = vrsqrt.f32 %v1271_v63  ;;  %v1224_v43 = vmul.f32 0.0051020407, %v1200_v37  ;;  %vm1371_vm0 = vmor %vm1369_vm15, %vm1370_vm14  ;;  %vm1379_vm3 = vweird.f32 %v1271_v63 }
 0x21c   :  { %v1365_v57 = vmul.f32 %v2127_v33, %v1364_v7  ;;  %v1362_v5 = vsel %vm1361_vm13, %v2125_v20, %v1358_v29  ;;  %v1402_v20 = vld [vmem:[%s3375_s3 + $0x48] sm:$0xff]  ;;  %v1427_v29 = vld [vmem:[%s3376_s4 + $0x50] sm:$0xff] }
 0x21d   :  { %v1248_v55 = vsub.f32 %v1224_v43, %v1236_v3  ;;  %v1413_v24 = vmul.f32 %v1401_v45, %v1362_v5  ;;  %v1404_v3 = vld [vmem:[%s3375_s3 + $0x58] sm:$0xff]  ;;  %s2188_s3 = smov [#allocation5]  }
 0x21e   :  { %v1366_v16 = vmul.f32 0.5, %v1365_v57 }
 0x21f   :  { %v1260_v15 = vmax.f32 %v1248_v55, 0.0  ;;  %1598 = vperm.xlu0 %2105, %v1448_v27   ;;  %1519 = vperm.xlu2 %2107, %v1413_v24   ;;  %v1437_v23 = vmul.f32 %v1413_v24, %v3260_v40 }
 0x220   :  { %v1367_v30 = vsub.f32 1.5, %v1366_v16 }
 0x221   :  { %v2129_v62 = vpop.eup %2128  ;;  %v1272_v61 = vadd.f32 1e-05, %v1260_v15  ;;  %v1449_v13 = vsub.f32 %v1425_v36, %v1437_v23 }
 0x222   :  { %v1374_v60 = vmul.f32 %v2129_v62, %v1271_v63  ;;  %v1368_v53 = vmul.f32 %v2127_v33, %v1367_v30  ;;  %vm1380_vm2 = vweird.f32 %v2129_v62  ;;  %v1457_v30 = vld [vmem:[#allocation2 + $0x20] sm:$0xff] }
 0x223   :  { %2130 = vrsqrt.f32 %v1272_v61  ;;  %vm1381_vm4 = vmor %vm1379_vm3, %vm1380_vm2  ;;  %vm1389_vm6 = vweird.f32 %v1272_v61 }
 0x224   :  { %v1375_v48 = vmul.f32 %v2129_v62, %v1374_v60  ;;  %v1372_v39 = vsel %vm1371_vm0, %v2127_v33, %v1368_v53 }
 0x225   :  { %v1414_v47 = vmul.f32 %v1402_v20, %v1372_v39  ;;  %v1453_v39 = vld [vmem:[#allocation2] sm:$0xff] }
 0x226   :  { %v1376_v18 = vmul.f32 0.5, %v1375_v48 }
 0x227   :  { %1524 = vperm.xlu1 %2106, %v1414_v47   ;;  %1603 = vperm.xlu2 %2107, %v1449_v13   ;;  %v1438_v11 = vmul.f32 %v1414_v47, %v3267_v12  ;;  %v1454_v47 = vld [vmem:[#allocation2 + $0x8] sm:$0xff] }
 0x228   :  { %v1377_v40 = vsub.f32 1.5, %v1376_v18 }
 0x229   :  { %v2131_v21 = vpop.eup %2130  ;;  %v1450_v37 = vsub.f32 %v1426_v9, %v1438_v11 }
 0x22a   :  { %v1384_v1 = vmul.f32 %v2131_v21, %v1272_v61  ;;  %v1378_v0 = vmul.f32 %v2129_v62, %v1377_v40  ;;  %vm1390_vm5 = vweird.f32 %v2131_v21 }
 0x22b   :  { %vm1391_vm7 = vmor %vm1389_vm6, %vm1390_vm5 }
 0x22c   :  { %v1385_v33 = vmul.f32 %v2131_v21, %v1384_v1  ;;  %v1382_v44 = vsel %vm1381_vm4, %v2129_v62, %v1378_v0  ;;  %v1458_v62 = vld [vmem:[#allocation2 + $0x28] sm:$0xff] }
 0x22d   :  { %v1415_v7 = vmul.f32 %v1403_v6, %v1382_v44  ;;  %v1455_v6 = vld [vmem:[#allocation2 + $0x10] sm:$0xff] }
 0x22e   :  { %v1386_v46 = vmul.f32 0.5, %v1385_v33 }
 0x22f   :  { %1529 = vperm.xlu0 %2105, %v1415_v7   ;;  %1608 = vperm.xlu1 %2106, %v1450_v37   ;;  %v1439_v63 = vmul.f32 %v1415_v7, %v3281_v8  ;;  %v1428_v8 = vld [vmem:[%s3376_s4 + $0x58] sm:$0xff]  ;;  %s1697_s4 = sshll.u32 %s2188_s3, 4  ;;  %s1698_s4 = int_to_ptr.vmem [resolvable:$true] %s1697_s4 }
 0x230   :  { %v1387_v12 = vsub.f32 1.5, %v1386_v46 }
 0x231   :  { %v1451_v57 = vsub.f32 %v1427_v29, %v1439_v63 }
 0x232   :  { %v1388_v45 = vmul.f32 %v2131_v21, %v1387_v12 }
 0x234   :  { %v1392_v43 = vsel %vm1391_vm7, %v2131_v21, %v1388_v45  ;;  %v1459_v45 = vld [vmem:[#allocation2 + $0x30] sm:$0xff] }
 0x235   :  { %v1416_v5 = vmul.f32 %v1404_v3, %v1392_v43  ;;  %v1460_v3 = vld [vmem:[#allocation2 + $0x38] sm:$0xff] }
 0x237   :  { %1613 = vperm.xlu0 %2105, %v1451_v57   ;;  %1534 = vperm.xlu2 %2107, %v1416_v5   ;;  %v1440_v55 = vmul.f32 %v1416_v5, %v3293_v25  ;;  %v1464_v57 = vld [vmem:[#allocation2 + $0x58] sm:$0xff] }
 0x239   :  { %v1452_v27 = vsub.f32 %v1428_v8, %v1440_v55 }
 0x23f   :  { %1618 = vperm.xlu2 %2107, %v1452_v27  }
 0x245   :  { %v1490_v24 = vpop.permute.xlu2 %1489 }
 0x246   :  { %v1541_v16 = vmul.f32 %v1490_v24, %v3004_v51  ;;  %v1542_v15 = vmul.f32 %v1490_v24, %v3076_v42 }
 0x24d   :  { %v1574_v61 = vpop.permute.xlu2 %1573 }
 0x24e   :  { %v1625_v23 = vadd.f32 %v1574_v61, %v1541_v16  ;;  %v1626_v60 = vadd.f32 %v1574_v61, %v1542_v15  ;;  %v1462_v61 = vld [vmem:[#allocation2 + $0x48] sm:$0xff] }
 0x250   :  { %v1649_v53 = vadd.f32 %v1625_v23, %v1457_v30  ;;  %v1650_v20 = vadd.f32 %v1626_v60, %v1458_v62  ;;  %v1461_v62 = vld [vmem:[#allocation2 + $0x40] sm:$0xff] }
 0x251   :  { %v1480_v36 = vpop.permute.xlu0 %1479 }
 0x252   :  { %1673 = vst [vmem:[#allocation5 + $0x20] sm:$0xff] %v1649_v53  ;;  %v1537_v25 = vmul.f32 %v1480_v36, %v2991_v19  ;;  %v1538_v48 = vmul.f32 %v1480_v36, %v3057_v32  ;;  %v1456_v19 = vld [vmem:[#allocation2 + $0x18] sm:$0xff] }
 0x253   :  { %1674 = vst.msk [vmem:[#allocation5 + $0x28] sm:$0xff] %vm1080_vm1, %v1650_v20 }
 0x255   :  { %v1564_v51 = vpop.permute.xlu1 %1563  ;;  %v1495_v21 = vpop.permute.xlu2 %1494 }
 0x256   :  { %v1621_v13 = vadd.f32 %v1564_v51, %v1537_v25  ;;  %v1622_v42 = vadd.f32 %v1564_v51, %v1538_v48  ;;  %v1543_v63 = vmul.f32 %v1495_v21, %v3008_v22 }
 0x258   :  { %v1645_v18 = vadd.f32 %v1621_v13, %v1453_v39  ;;  %v1646_v40 = vadd.f32 %v1622_v42, %v1454_v47  ;;  %v1469_v47 = vld [vmem:[#allocation2 + $0x80] sm:$0xff] }
 0x25a   :  { %1669 = vst [vmem:[#allocation5] sm:$0xff] %v1645_v18 }
 0x25b   :  { %1670 = vst.msk [vmem:[#allocation5 + $0x8] sm:$0xff] %vm1080_vm1, %v1646_v40 }
 0x25d   :  { %v1485_v11 = vpop.permute.xlu1 %1484 }
 0x25e   :  { %v1539_v1 = vmul.f32 %v1485_v11, %v2995_v49  ;;  %v1540_v0 = vmul.f32 %v1485_v11, %v3065_v41  ;;  %v1544_v49 = vmul.f32 %v1495_v21, %v3090_v10  ;;  %v1463_v41 = vld [vmem:[#allocation2 + $0x50] sm:$0xff]  ;;  %v1465_v11 = vld [vmem:[#allocation2 + $0x60] sm:$0xff] }
 0x25f   :  { %v1569_v9 = vpop.permute.xlu0 %1568 }
 0x260   :  { %v1623_v32 = vadd.f32 %v1569_v9, %v1539_v1  ;;  %v1624_v33 = vadd.f32 %v1569_v9, %v1540_v0  ;;  %v1466_v1 = vld [vmem:[#allocation2 + $0x68] sm:$0xff] }
 0x261   :  { %v1505_v44 = vpop.permute.xlu2 %1504 }
 0x262   :  { %v1647_v7 = vadd.f32 %v1623_v32, %v1455_v6  ;;  %v1648_v37 = vadd.f32 %v1624_v33, %v1456_v19  ;;  %v1547_v46 = vmul.f32 %v1505_v44, %v3021_v4  ;;  %v1548_v12 = vmul.f32 %v1505_v44, %v3112_v52  ;;  %v1467_v44 = vld [vmem:[#allocation2 + $0x70] sm:$0xff] }
 0x264   :  { %1671 = vst [vmem:[#allocation5 + $0x10] sm:$0xff] %v1647_v7  ;;  %v1468_v7 = vld [vmem:[#allocation2 + $0x78] sm:$0xff] }
 0x265   :  { %1672 = vst.msk [vmem:[#allocation5 + $0x18] sm:$0xff] %vm1080_vm1, %v1648_v37 }
 0x269   :  { %v1589_v29 = vpop.permute.xlu2 %1588  ;;  %v1579_v43 = vpop.permute.xlu1 %1578 }
 0x26a   :  { %v1631_v5 = vadd.f32 %v1589_v29, %v1547_v46  ;;  %v1632_v55 = vadd.f32 %v1589_v29, %v1548_v12  ;;  %v1627_v8 = vadd.f32 %v1579_v43, %v1543_v63  ;;  %v1628_v27 = vadd.f32 %v1579_v43, %v1544_v49 }
 0x26c   :  { %v1655_v24 = vadd.f32 %v1631_v5, %v1463_v41  ;;  %v1651_v16 = vadd.f32 %v1627_v8, %v1459_v45  ;;  %v1652_v15 = vadd.f32 %v1628_v27, %v1460_v3  ;;  %v1656_v4 = vadd.f32 %v1632_v55, %v1464_v57  ;;  %v1475_v45 = vld [vmem:[#allocation2 + $0xb0] sm:$0xff] }
 0x26d   :  { %v1471_v27 = vld [vmem:[#allocation2 + $0x90] sm:$0xff] }
 0x26e   :  { %1679 = vst [vmem:[#allocation5 + $0x50] sm:$0xff] %v1655_v24  ;;  %v1472_v24 = vld [vmem:[#allocation2 + $0x98] sm:$0xff] }
 0x26f   :  { %1675 = vst [vmem:[#allocation5 + $0x30] sm:$0xff] %v1651_v16  ;;  %v1584_v30 = vpop.permute.xlu0 %1583 }
 0x270   :  { %1676 = vst.msk [vmem:[#allocation5 + $0x38] sm:$0xff] %vm1080_vm1, %v1652_v15 }
 0x271   :  { %1680 = vst.msk [vmem:[#allocation5 + $0x58] sm:$0xff] %vm1080_vm1, %v1656_v4  ;;  %v1500_v22 = vpop.permute.xlu1 %1499 }
 0x272   :  { %v1545_v10 = vmul.f32 %v1500_v22, %v3017_v2  ;;  %v1546_v52 = vmul.f32 %v1500_v22, %v3101_v26  ;;  %v1470_v2 = vld [vmem:[#allocation2 + $0x88] sm:$0xff] }
 0x274   :  { %v1629_v23 = vadd.f32 %v1584_v30, %v1545_v10  ;;  %v1630_v60 = vadd.f32 %v1584_v30, %v1546_v52  ;;  %v1473_v30 = vld [vmem:[#allocation2 + $0xa0] sm:$0xff] }
 0x276   :  { %v1653_v53 = vadd.f32 %v1629_v23, %v1461_v62  ;;  %v1654_v20 = vadd.f32 %v1630_v60, %v1462_v61  ;;  %v1474_v62 = vld [vmem:[#allocation2 + $0xa8] sm:$0xff] }
 0x278   :  { %1677 = vst [vmem:[#allocation5 + $0x40] sm:$0xff] %v1653_v53 }
 0x279   :  { %v1520_v36 = vpop.permute.xlu2 %1519  ;;  %1678 = vst.msk [vmem:[#allocation5 + $0x48] sm:$0xff] %vm1080_vm1, %v1654_v20 }
 0x27a   :  { %v1553_v25 = vmul.f32 %v1520_v36, %v3041_v31  ;;  %v1554_v48 = vmul.f32 %v1520_v36, %v3142_v34 }
 0x281   :  { %v1510_v39 = vpop.permute.xlu1 %1509  ;;  %v1604_v51 = vpop.permute.xlu2 %1603 }
 0x282   :  { %v1637_v26 = vadd.f32 %v1604_v51, %v1553_v25  ;;  %v1638_v13 = vadd.f32 %v1604_v51, %v1554_v48  ;;  %v1549_v40 = vmul.f32 %v1510_v39, %v3031_v14  ;;  %v1550_v21 = vmul.f32 %v1510_v39, %v3120_v35 }
 0x284   :  { %v1661_v42 = vadd.f32 %v1637_v26, %v1469_v47  ;;  %v1662_v18 = vadd.f32 %v1638_v13, %v1470_v2 }
 0x286   :  { %1685 = vst [vmem:[#allocation5 + $0x80] sm:$0xff] %v1661_v42 }
 0x287   :  { %1686 = vst.msk [vmem:[#allocation5 + $0x88] sm:$0xff] %vm1080_vm1, %v1662_v18 }
 0x289   :  { %v1594_v31 = vpop.permute.xlu1 %1593  ;;  %v1515_v0 = vpop.permute.xlu0 %1514 }
 0x28a   :  { %v1633_v34 = vadd.f32 %v1594_v31, %v1549_v40  ;;  %v1634_v6 = vadd.f32 %v1594_v31, %v1550_v21  ;;  %v1551_v32 = vmul.f32 %v1515_v0, %v3036_v28  ;;  %v1552_v33 = vmul.f32 %v1515_v0, %v3131_v38  ;;  %v1476_v28 = vld [vmem:[#allocation2 + $0xb8] sm:$0xff] }
 0x28c   :  { %v1657_v19 = vadd.f32 %v1633_v34, %v1465_v11  ;;  %v1658_v9 = vadd.f32 %v1634_v6, %v1466_v1 }
 0x28e   :  { %1681 = vst [vmem:[#allocation5 + $0x60] sm:$0xff] %v1657_v19 }
 0x28f   :  { %1682 = vst.msk [vmem:[#allocation5 + $0x68] sm:$0xff] %vm1080_vm1, %v1658_v9 }
 0x291   :  { %v1599_v14 = vpop.permute.xlu0 %1598  ;;  %v1535_v37 = vpop.permute.xlu2 %1534 }
 0x292   :  { %v1635_v35 = vadd.f32 %v1599_v14, %v1551_v32  ;;  %v1636_v46 = vadd.f32 %v1599_v14, %v1552_v33  ;;  %v1559_v49 = vmul.f32 %v1535_v37, %v3054_v59  ;;  %v1560_v41 = vmul.f32 %v1535_v37, %v3175_v56 }
 0x294   :  { %v1659_v12 = vadd.f32 %v1635_v35, %v1467_v44  ;;  %v1660_v63 = vadd.f32 %v1636_v46, %v1468_v7 }
 0x296   :  { %1683 = vst [vmem:[#allocation5 + $0x70] sm:$0xff] %v1659_v12 }
 0x297   :  { %1684 = vst.msk [vmem:[#allocation5 + $0x78] sm:$0xff] %vm1080_vm1, %v1660_v63 }
 0x299   :  { %v1525_v29 = vpop.permute.xlu1 %1524  ;;  %v1619_v3 = vpop.permute.xlu2 %1618 }
 0x29a   :  { %v1643_v38 = vadd.f32 %v1619_v3, %v1559_v49  ;;  %v1644_v43 = vadd.f32 %v1619_v3, %v1560_v41  ;;  %v1555_v55 = vmul.f32 %v1525_v29, %v3046_v50  ;;  %v1556_v8 = vmul.f32 %v1525_v29, %v3153_v58 }
 0x29c   :  { %v1667_v57 = vadd.f32 %v1643_v38, %v1475_v45  ;;  %v1668_v5 = vadd.f32 %v1644_v43, %v1476_v28 }
 0x29e   :  { %1691 = vst [vmem:[#allocation5 + $0xb0] sm:$0xff] %v1667_v57 }
 0x29f   :  { %1692 = vst.msk [vmem:[#allocation5 + $0xb8] sm:$0xff] %vm1080_vm1, %v1668_v5 }
 0x2a1   :  { %v1609_v59 = vpop.permute.xlu1 %1608  ;;  %v1530_v16 = vpop.permute.xlu0 %1529 }
 0x2a2   :  { %v1639_v56 = vadd.f32 %v1609_v59, %v1555_v55  ;;  %v1640_v15 = vadd.f32 %v1609_v59, %v1556_v8  ;;  %v1557_v10 = vmul.f32 %v1530_v16, %v3051_v54  ;;  %v1558_v52 = vmul.f32 %v1530_v16, %v3164_v17 }
 0x2a4   :  { %v1663_v4 = vadd.f32 %v1639_v56, %v1471_v27  ;;  %v1664_v22 = vadd.f32 %v1640_v15, %v1472_v24 }
 0x2a6   :  { %1687 = vst [vmem:[#allocation5 + $0x90] sm:$0xff] %v1663_v4 }
 0x2a7   :  { %1688 = vst.msk [vmem:[#allocation5 + $0x98] sm:$0xff] %vm1080_vm1, %v1664_v22 }
 0x2a9   :  { %v1614_v50 = vpop.permute.xlu0 %1613 }
 0x2aa   :  { %v1641_v61 = vadd.f32 %v1614_v50, %v1557_v10  ;;  %v1642_v58 = vadd.f32 %v1614_v50, %v1558_v52 }
 0x2ac   :  { %v1665_v23 = vadd.f32 %v1641_v61, %v1473_v30  ;;  %v1666_v60 = vadd.f32 %v1642_v58, %v1474_v62 }
 0x2ae   :  { %1689 = vst [vmem:[#allocation5 + $0xa0] sm:$0xff] %v1665_v23 }
 0x2af   :  { %1690 = vst.msk [vmem:[#allocation5 + $0xa8] sm:$0xff] %vm1080_vm1, %v1666_v60 }
 0x2b0   :  { %1705 = dma.vmem_to_hbm [thread:$0]  %s1698_s4, 3072, %s1700_s29, [#allocation4], %s2185_s26, %s2185_s26, %s2186_s27  }
 0x2b1   :  { %2182 = dma.done.wait [#allocation4], 3072  }
 0x2b2   :  { %2183 = vsyncadd [#allocation4], 4294964224 }
 0x2b3   :  { %1710 = vsyncpa [#allocation3], 1 }
 0x2b4   :  { %1711 = vsyncpa [#allocation4], 1 }

</bundles_post_ra>
